<compile_context>
chip_gen: v7x
topology: tpu7x:2x2x1
jax: 0.10.0
libtpu: 0.0.40
codegen_flags: <defaults>
</compile_context>

<pallas_src>
from functools import partial

import jax
import jax.numpy as jnp
from jax import lax
from jax.experimental import pallas as pl
from jax.experimental.pallas import tpu as pltpu


# ----------------------------- Pallas kernels ------------------------------

def _conv_bn_lrelu_kernel(a_ref, w_ref, g_ref, b_ref, o_ref):
    """Fused: (M,K)@(K,C) matmul -> BatchNorm (batch stats over M) -> LeakyReLU."""
    y = jnp.dot(a_ref[...], w_ref[...], preferred_element_type=jnp.float32)  # (M, C)
    mean = jnp.mean(y, axis=0, keepdims=True)                 # per-channel mean
    var = jnp.mean((y - mean) ** 2, axis=0, keepdims=True)    # biased variance
    yn = (y - mean) * lax.rsqrt(var + 1e-5)
    yn = yn * g_ref[...] + b_ref[...]
    o_ref[...] = jnp.where(yn > 0, yn, 0.01 * yn)


def _conv_head_kernel(a_ref, w_ref, o_ref, *, apply_sigmoid):
    """Fused final conv (Cout == 1): per-row dot product (+ optional sigmoid)."""
    y = jnp.sum(a_ref[...] * w_ref[...], axis=1, keepdims=True)   # (M, 1)
    if apply_sigmoid:
        y = 1.0 / (1.0 + jnp.exp(-y))
    o_ref[...] = y


_ARB = pltpu.CompilerParams(dimension_semantics=("arbitrary",))


def _fused_conv_bn_lrelu_call(patches, wmat, gamma, beta):
    M, K = patches.shape
    C = wmat.shape[1]
    return pl.pallas_call(
        _conv_bn_lrelu_kernel,
        out_shape=jax.ShapeDtypeStruct((M, C), jnp.float32),
        grid=(1,),
        in_specs=[pl.BlockSpec((M, K), lambda i: (0, 0)),
                  pl.BlockSpec((K, C), lambda i: (0, 0)),
                  pl.BlockSpec((1, C), lambda i: (0, 0)),
                  pl.BlockSpec((1, C), lambda i: (0, 0))],
        out_specs=pl.BlockSpec((M, C), lambda i: (0, 0)),
        compiler_params=_ARB,
    )(patches, wmat, gamma, beta)


def _fused_conv_head_call(patches, wrow, apply_sigmoid):
    M, K = patches.shape
    return pl.pallas_call(
        partial(_conv_head_kernel, apply_sigmoid=apply_sigmoid),
        out_shape=jax.ShapeDtypeStruct((M, 1), jnp.float32),
        grid=(1,),
        in_specs=[pl.BlockSpec((M, K), lambda i: (0, 0)),
                  pl.BlockSpec((1, K), lambda i: (0, 0))],
        out_specs=pl.BlockSpec((M, 1), lambda i: (0, 0)),
        compiler_params=_ARB,
    )(patches, wrow)


# ------------------------------ JAX glue ----------------------------------

def im2col_nhwc(x, kh, kw, stride, pad):
    """x: (N, H, W, C) -> patches (N*Ho*Wo, kh*kw*C) with (kh, kw, C) C-fastest order."""
    N, H, W, C = x.shape
    if pad:
        x = jnp.pad(x, ((0, 0), (pad, pad), (pad, pad), (0, 0)))
    Ho = (H + 2 * pad - kh) // stride + 1
    Wo = (W + 2 * pad - kw) // stride + 1
    cols = []
    for i in range(kh):
        for j in range(kw):
            cols.append(x[:, i:i + stride * Ho:stride, j:j + stride * Wo:stride, :])
    patches = jnp.stack(cols, axis=3)                 # (N, Ho, Wo, kh*kw, C)
    return patches.reshape(N * Ho * Wo, kh * kw * C), Ho, Wo


def conv_bn_lrelu(x_nhwc, w, gamma, beta, stride=2, pad=1):
    """Conv2d(bias=False) + BatchNorm2d(train) + LeakyReLU(0.01); NHWC in/out."""
    N = x_nhwc.shape[0]
    Cout, Cin, kh, kw = w.shape
    patches, Ho, Wo = im2col_nhwc(x_nhwc, kh, kw, stride, pad)
    # Weight as (kh*kw*Cin, Cout) matching the patch feature ordering.
    wmat = w.transpose(2, 3, 1, 0).reshape(kh * kw * Cin, Cout).astype(jnp.float32)
    y = _fused_conv_bn_lrelu_call(
        patches.astype(jnp.float32), wmat,
        gamma.reshape(1, Cout).astype(jnp.float32),
        beta.reshape(1, Cout).astype(jnp.float32))
    return y.reshape(N, Ho, Wo, Cout)


def conv_head(x_nhwc, w, d_sigmoid=True):
    """Final Conv2d(Cin->1, k4, s1, p0, bias=False) (+ Sigmoid); NHWC in/out."""
    N = x_nhwc.shape[0]
    Cout, Cin, kh, kw = w.shape
    assert Cout == 1
    patches, Ho, Wo = im2col_nhwc(x_nhwc, kh, kw, stride=1, pad=0)
    wrow = w.transpose(2, 3, 1, 0).reshape(1, kh * kw * Cin).astype(jnp.float32)
    y = _fused_conv_head_call(patches.astype(jnp.float32), wrow, d_sigmoid)
    return y.reshape(N, Ho, Wo, 1)


def discriminator_forward(x_nchw, params, d_sigmoid=True):
    h = jnp.transpose(x_nchw, (0, 2, 3, 1))          # NCHW -> NHWC (boundary only)
    h = conv_bn_lrelu(h, params["w1"], params["g1"], params["b1"])
    h = conv_bn_lrelu(h, params["w2"], params["g2"], params["b2"])
    h = conv_bn_lrelu(h, params["w3"], params["g3"], params["b3"])
    y = conv_head(h, params["w4"], d_sigmoid)
    return jnp.transpose(y, (0, 3, 1, 2))            # NHWC -> NCHW


# --------------------------- pure-JAX reference -----------------------------

def reference_forward(x, params, d_sigmoid=True, eps=1e-5):
    def conv(x, w, stride, pad):
        return lax.conv_general_dilated(
            x, w, window_strides=(stride, stride),
            padding=[(pad, pad), (pad, pad)],
            dimension_numbers=("NCHW", "OIHW", "NCHW"))

    def bn(y, g, b):
        mean = jnp.mean(y, axis=(0, 2, 3), keepdims=True)
        var = jnp.mean((y - mean) ** 2, axis=(0, 2, 3), keepdims=True)
        return ((y - mean) / jnp.sqrt(var + eps)
                * g.reshape(1, -1, 1, 1) + b.reshape(1, -1, 1, 1))

    def lrelu(y):
        return jnp.where(y > 0, y, 0.01 * y)

    h = lrelu(bn(conv(x, params["w1"], 2, 1), params["g1"], params["b1"]))
    h = lrelu(bn(conv(h, params["w2"], 2, 1), params["g2"], params["b2"]))
    h = lrelu(bn(conv(h, params["w3"], 2, 1), params["g3"], params["b3"]))
    y = conv(h, params["w4"], 1, 0)
    if d_sigmoid:
        y = jax.nn.sigmoid(y)
    return y


# --------------------------------- main -------------------------------------

if __name__ == "__main__":
    key = jax.random.PRNGKey(0)
    kx, k1, k2, k3, k4 = jax.random.split(key, 5)

    # opts.format == 'RGB' -> 3 channels; 32x32 images (standard DCGAN-D input).
    N, C, H, W = 2, 3, 32, 32
    x = jax.random.normal(kx, (N, C, H, W), jnp.float32)

    params = {
        "w1": 0.05 * jax.random.normal(k1, (32, 3, 4, 4), jnp.float32),
        "g1": jnp.ones((32,), jnp.float32), "b1": jnp.zeros((32,), jnp.float32),
        "w2": 0.05 * jax.random.normal(k2, (64, 32, 4, 4), jnp.float32),
        "g2": jnp.ones((64,), jnp.float32), "b2": jnp.zeros((64,), jnp.float32),
        "w3": 0.05 * jax.random.normal(k3, (128, 64, 4, 4), jnp.float32),
        "g3": jnp.ones((128,), jnp.float32), "b3": jnp.zeros((128,), jnp.float32),
        "w4": 0.05 * jax.random.normal(k4, (1, 128, 4, 4), jnp.float32),
    }

    out = discriminator_forward(x, params, d_sigmoid=True)
    out = jax.block_until_ready(out)

    assert out.shape == (N, 1, 1, 1), out.shape

    ref = reference_forward(x, params, d_sigmoid=True)
    err = float(jnp.max(jnp.abs(out - ref)))
    assert err < 1e-3, f"mismatch vs reference: max abs err = {err}"

    print("KERNEL_OK")
</pallas_src>

<mosaic_0001>
module attributes {stable_mosaic.version = 11 : i64} {
  func.func @_conv_bn_lrelu_kernel(%arg0: i32, %arg1: memref<512x48xf32, #tpu.memory_space<vmem>>, %arg2: memref<48x32xf32, #tpu.memory_space<vmem>>, %arg3: memref<1x32xf32, #tpu.memory_space<vmem>>, %arg4: memref<1x32xf32, #tpu.memory_space<vmem>>, %arg5: memref<512x32xf32, #tpu.memory_space<vmem>>) attributes {dimension_semantics = [#tpu.dimension_semantics<arbitrary>], iteration_bounds = array<i64: 1>, scalar_prefetch = 0 : i64, scratch_operands = 0 : i64, tpu.core_type = #tpu.core_type<tc>, window_params = [{pipeline_mode = #tpu.pipeline_mode<synchronous>, transform_indices = @transform_0, window_bounds = array<i64: 512, 48>}, {pipeline_mode = #tpu.pipeline_mode<synchronous>, transform_indices = @transform_1, window_bounds = array<i64: 48, 32>}, {pipeline_mode = #tpu.pipeline_mode<synchronous>, transform_indices = @transform_2, window_bounds = array<i64: 1, 32>}, {pipeline_mode = #tpu.pipeline_mode<synchronous>, transform_indices = @transform_3, window_bounds = array<i64: 1, 32>}, {pipeline_mode = #tpu.pipeline_mode<synchronous>, transform_indices = @transform_4, window_bounds = array<i64: 512, 32>}]} {
    %c0 = arith.constant 0 : index
    %c0_0 = arith.constant 0 : index
    %0 = vector.load %arg1[%c0, %c0_0] : memref<512x48xf32, #tpu.memory_space<vmem>>, vector<512x48xf32>
    %c0_1 = arith.constant 0 : index
    %c0_2 = arith.constant 0 : index
    %1 = vector.load %arg2[%c0_1, %c0_2] : memref<48x32xf32, #tpu.memory_space<vmem>>, vector<48x32xf32>
    %cst = arith.constant dense<0.000000e+00> : vector<512x32xf32>
    %2 = tpu.matmul %0, %1, %cst {dimension_numbers = #tpu.dot_dimension_numbers<[1], [0], [0], [1], [0, 0, 1, 1], [], []>} : vector<512x48xf32>, vector<48x32xf32>, vector<512x32xf32> -> vector<512x32xf32>
    %cst_3 = arith.constant dense<0.000000e+00> : vector<32xf32>
    %3 = vector.multi_reduction <add>, %2, %cst_3 [0] : vector<512x32xf32> to vector<32xf32>
    %4 = vector.shape_cast %3 : vector<32xf32> to vector<1x32xf32>
    %cst_4 = arith.constant 5.120000e+02 : f32
    %5 = vector.broadcast %cst_4 : f32 to vector<1x32xf32>
    %6 = arith.divf %4, %5 : vector<1x32xf32>
    %7 = vector.broadcast %6 : vector<1x32xf32> to vector<512x32xf32>
    %8 = arith.subf %2, %7 : vector<512x32xf32>
    %9 = arith.mulf %8, %8 : vector<512x32xf32>
    %cst_5 = arith.constant dense<0.000000e+00> : vector<32xf32>
    %10 = vector.multi_reduction <add>, %9, %cst_5 [0] : vector<512x32xf32> to vector<32xf32>
    %11 = vector.shape_cast %10 : vector<32xf32> to vector<1x32xf32>
    %cst_6 = arith.constant 5.120000e+02 : f32
    %12 = vector.broadcast %cst_6 : f32 to vector<1x32xf32>
    %13 = arith.divf %11, %12 : vector<1x32xf32>
    %14 = vector.broadcast %6 : vector<1x32xf32> to vector<512x32xf32>
    %15 = arith.subf %2, %14 : vector<512x32xf32>
    %cst_7 = arith.constant 9.99999974E-6 : f32
    %16 = vector.broadcast %cst_7 : f32 to vector<1x32xf32>
    %17 = arith.addf %13, %16 : vector<1x32xf32>
    %18 = math.rsqrt %17 : vector<1x32xf32>
    %19 = vector.broadcast %18 : vector<1x32xf32> to vector<512x32xf32>
    %20 = arith.mulf %15, %19 : vector<512x32xf32>
    %c0_8 = arith.constant 0 : index
    %c0_9 = arith.constant 0 : index
    %21 = vector.load %arg3[%c0_8, %c0_9] : memref<1x32xf32, #tpu.memory_space<vmem>>, vector<1x32xf32>
    %22 = vector.broadcast %21 : vector<1x32xf32> to vector<512x32xf32>
    %23 = arith.mulf %20, %22 : vector<512x32xf32>
    %c0_10 = arith.constant 0 : index
    %c0_11 = arith.constant 0 : index
    %24 = vector.load %arg4[%c0_10, %c0_11] : memref<1x32xf32, #tpu.memory_space<vmem>>, vector<1x32xf32>
    %25 = vector.broadcast %24 : vector<1x32xf32> to vector<512x32xf32>
    %26 = arith.addf %23, %25 : vector<512x32xf32>
    %cst_12 = arith.constant 0.000000e+00 : f32
    %27 = vector.broadcast %cst_12 : f32 to vector<512x32xf32>
    %28 = arith.cmpf ogt, %26, %27 : vector<512x32xf32>
    %cst_13 = arith.constant 0.00999999977 : f32
    %29 = vector.broadcast %cst_13 : f32 to vector<512x32xf32>
    %30 = arith.mulf %29, %26 : vector<512x32xf32>
    %31 = arith.select %28, %26, %30 : vector<512x32xi1>, vector<512x32xf32>
    %c0_14 = arith.constant 0 : index
    %c0_15 = arith.constant 0 : index
    %32 = vector.load %arg5[%c0_14, %c0_15] : memref<512x32xf32, #tpu.memory_space<vmem>>, vector<512x32xf32>
    tpu.vector_store %arg5[%c0_14, %c0_15], %31 {strides = array<i32>} : memref<512x32xf32, #tpu.memory_space<vmem>>, vector<512x32xf32>,
    return
  }
  func.func @transform_0(%arg0: i32) -> (i32, i32) {
    %c0_i32 = arith.constant 0 : i32
    %c0_i32_0 = arith.constant 0 : i32
    %c0_i32_1 = arith.constant 0 : i32
    return %c0_i32, %c0_i32_0 : i32, i32
  }
  func.func @transform_1(%arg0: i32) -> (i32, i32) {
    %c0_i32 = arith.constant 0 : i32
    %c0_i32_0 = arith.constant 0 : i32
    %c0_i32_1 = arith.constant 0 : i32
    return %c0_i32, %c0_i32_0 : i32, i32
  }
  func.func @transform_2(%arg0: i32) -> (i32, i32) {
    %c0_i32 = arith.constant 0 : i32
    %c0_i32_0 = arith.constant 0 : i32
    %c0_i32_1 = arith.constant 0 : i32
    return %c0_i32, %c0_i32_0 : i32, i32
  }
  func.func @transform_3(%arg0: i32) -> (i32, i32) {
    %c0_i32 = arith.constant 0 : i32
    %c0_i32_0 = arith.constant 0 : i32
    %c0_i32_1 = arith.constant 0 : i32
    return %c0_i32, %c0_i32_0 : i32, i32
  }
  func.func @transform_4(%arg0: i32) -> (i32, i32) {
    %c0_i32 = arith.constant 0 : i32
    %c0_i32_0 = arith.constant 0 : i32
    %c0_i32_1 = arith.constant 0 : i32
    return %c0_i32, %c0_i32_0 : i32, i32
  }
}

</mosaic_0001>

<bundles_post_ra>
// kernel: tpu_custom_call.1
= control target key start
LH: loop header
LB: loop body
LE: loop exit
PB: predicated region body
PF: predicated region fallthrough
CT: control target
= control target key end

     0   :  { %vm87_vm0 = vcmask 392192   ;;  %vm665_vm1 = vcmask 261120   ;;  %s4318_s1 = inlined_call_operand.vmem [shape: f32[48,32], index: 1, kind: input, shape index: {}]   ;;  %s4319_s0 = inlined_call_operand.vmem [shape: f32[512,48], index: 0, kind: input, shape index: {}]   ;;  %s4320_s2 = inlined_call_operand.vmem [shape: f32[1,32], index: 2, kind: input, shape index: {}]   ;;  %s4321_s3 = inlined_call_operand.vmem [shape: f32[1,32], index: 3, kind: input, shape index: {}]   ;;  %s4322_s4 = inlined_call_operand.vmem [shape: f32[512,32], index: 4, kind: output, shape index: {}]  }
   0x1   :  { %v81_v0 = vld [vmem:[%s4318_s1] sm:$0xff]  ;;  %v82_v1 = vld [vmem:[%s4318_s1 + $0x8] sm:$0xff]  ;;  %v83_v2 = vld [vmem:[%s4318_s1 + $0x10] sm:$0xff] }
   0x2   :  { %v1775_v3 = vpack.c.bf16 %v82_v1, %v81_v0  ;;  %v84_v4 = vld [vmem:[%s4318_s1 + $0x18] sm:$0xff]  ;;  %v85_v6 = vld [vmem:[%s4318_s1 + $0x20] sm:$0xff]  ;;  %v86_v7 = vld [vmem:[%s4318_s1 + $0x28] sm:$0xff] }
   0x3   :  { %v1779_v5 = vpack.c.bf16 %v84_v4, %v83_v2  ;;  %v17_v8 = vld [vmem:[%s4319_s0] sm:$0xff]  ;;  %v1783_v9 = vpack.c.bf16 %v86_v7, %v85_v6  ;;  %v18_v10 = vld [vmem:[%s4319_s0 + $0x8] sm:$0xff]  ;;  %v19_v12 = vld [vmem:[%s4319_s0 + $0x10] sm:$0xff] }
   0x4   :  { %1776 = vmatprep.subr.bf16.mxu0 %v1775_v3  ;;  %1679 = vmatprep.mubr.msk.f32.mxu0 %vm87_vm0, %v17_v8  ;;  %v49_v11 = vld [vmem:[%s4319_s0 + $0x100] sm:$0xff]  ;;  %v50_v13 = vld [vmem:[%s4319_s0 + $0x108] sm:$0xff]  ;;  %v51_v14 = vld [vmem:[%s4319_s0 + $0x110] sm:$0xff] }
   0x5   :  { %1778 = vmatpush3.bf16.msra.mxu0 %v1775_v3  ;;  %1787 = vmatprep.subr.bf16.mxu1 %v1775_v3  ;;  %v20_v15 = vld [vmem:[%s4319_s0 + $0x18] sm:$0xff]  ;;  %v21_v16 = vld [vmem:[%s4319_s0 + $0x20] sm:$0xff]  ;;  %v22_v19 = vld [vmem:[%s4319_s0 + $0x28] sm:$0xff] }
   0x6   :  { %1780 = vmatprep.subr.bf16.mxu0 %v1779_v5  ;;  %1790 = vmatpush3.bf16.msra.mxu1 %v1775_v3  ;;  %v52_v17 = vld [vmem:[%s4319_s0 + $0x118] sm:$0xff]  ;;  %v53_v18 = vld [vmem:[%s4319_s0 + $0x120] sm:$0xff]  ;;  %v23_v20 = vld [vmem:[%s4319_s0 + $0x30] sm:$0xff] }
   0x7   :  { %1788 = vmatprep.subr.bf16.mxu1 %v1779_v5  ;;  %1727 = vmatprep.mubr.msk.f32.mxu1 %vm87_vm0, %v49_v11  ;;  %v54_v21 = vld [vmem:[%s4319_s0 + $0x128] sm:$0xff]  ;;  %v55_v22 = vld [vmem:[%s4319_s0 + $0x130] sm:$0xff]  ;;  %v24_v23 = vld [vmem:[%s4319_s0 + $0x38] sm:$0xff] }
   0x8   :  { %v25_v24 = vld [vmem:[%s4319_s0 + $0x40] sm:$0xff]  ;;  %v56_v25 = vld [vmem:[%s4319_s0 + $0x138] sm:$0xff]  ;;  %v26_v27 = vld [vmem:[%s4319_s0 + $0x48] sm:$0xff] }
   0x9   :  { %1782 = vmatpush3.bf16.msra.mxu0 %v1779_v5  ;;  %v57_v26 = vld [vmem:[%s4319_s0 + $0x140] sm:$0xff]  ;;  %v27_v28 = vld [vmem:[%s4319_s0 + $0x50] sm:$0xff]  ;;  %v58_v29 = vld [vmem:[%s4319_s0 + $0x148] sm:$0xff] }
   0xa   :  { %1784 = vmatprep.subr.bf16.mxu0 %v1783_v9  ;;  %1791 = vmatpush3.bf16.msra.mxu1 %v1779_v5  ;;  %v59_v30 = vld [vmem:[%s4319_s0 + $0x150] sm:$0xff]  ;;  %v28_v31 = vld [vmem:[%s4319_s0 + $0x58] sm:$0xff]  ;;  %v29_v32 = vld [vmem:[%s4319_s0 + $0x60] sm:$0xff] }
   0xb   :  { %1789 = vmatprep.subr.bf16.mxu1 %v1783_v9  ;;  %v60_v33 = vld [vmem:[%s4319_s0 + $0x158] sm:$0xff]  ;;  %v61_v34 = vld [vmem:[%s4319_s0 + $0x160] sm:$0xff]  ;;  %v30_v35 = vld [vmem:[%s4319_s0 + $0x68] sm:$0xff] }
   0xc   :  { %v31_v36 = vld [vmem:[%s4319_s0 + $0x70] sm:$0xff]  ;;  %v62_v37 = vld [vmem:[%s4319_s0 + $0x168] sm:$0xff]  ;;  %v32_v39 = vld [vmem:[%s4319_s0 + $0x78] sm:$0xff] }
   0xd   :  { %1786 = vmatpush3.bf16.msra.mxu0 %v1783_v9  ;;  %v63_v38 = vld [vmem:[%s4319_s0 + $0x170] sm:$0xff]  ;;  %v33_v40 = vld [vmem:[%s4319_s0 + $0x80] sm:$0xff]  ;;  %v64_v41 = vld [vmem:[%s4319_s0 + $0x178] sm:$0xff] }
   0xe   :  { %1792 = vmatpush3.bf16.msra.mxu1 %v1783_v9  ;;  %v65_v42 = vld [vmem:[%s4319_s0 + $0x180] sm:$0xff]  ;;  %v34_v43 = vld [vmem:[%s4319_s0 + $0x88] sm:$0xff]  ;;  %v35_v44 = vld [vmem:[%s4319_s0 + $0x90] sm:$0xff] }
   0xf   :  { %v66_v45 = vld [vmem:[%s4319_s0 + $0x188] sm:$0xff]  ;;  %v67_v46 = vld [vmem:[%s4319_s0 + $0x190] sm:$0xff]  ;;  %v36_v47 = vld [vmem:[%s4319_s0 + $0x98] sm:$0xff] }
  0x10   :  { %1680 = vmatmul.mubr.msk.f32.vlgmr.msra.gmra.mrb[0].mxu0 %vm87_vm0, %v18_v10  ;;  %v37_v48 = vld [vmem:[%s4319_s0 + $0xa0] sm:$0xff]  ;;  %v68_v49 = vld [vmem:[%s4319_s0 + $0x198] sm:$0xff]  ;;  %v38_v51 = vld [vmem:[%s4319_s0 + $0xa8] sm:$0xff] }
  0x11   :  { %1682 = vmatprep.mubr.msk.f32.mxu0 %vm87_vm0, %v19_v12  ;;  %1728 = vmatmul.mubr.msk.f32.vlgmr.msra.gmra.mrb[0].mxu1 %vm87_vm0, %v50_v13  ;;  %v69_v50 = vld [vmem:[%s4319_s0 + $0x1a0] sm:$0xff]  ;;  %v39_v52 = vld [vmem:[%s4319_s0 + $0xb0] sm:$0xff]  ;;  %v70_v53 = vld [vmem:[%s4319_s0 + $0x1a8] sm:$0xff] }
  0x12   :  { %1730 = vmatprep.mubr.msk.f32.mxu1 %vm87_vm0, %v51_v14  ;;  %v71_v54 = vld [vmem:[%s4319_s0 + $0x1b0] sm:$0xff]  ;;  %v40_v55 = vld [vmem:[%s4319_s0 + $0xb8] sm:$0xff]  ;;  %v41_v56 = vld [vmem:[%s4319_s0 + $0xc0] sm:$0xff] }
  0x13   :  { %v72_v57 = vld [vmem:[%s4319_s0 + $0x1b8] sm:$0xff]  ;;  %v73_v58 = vld [vmem:[%s4319_s0 + $0x1c0] sm:$0xff]  ;;  %v42_v59 = vld [vmem:[%s4319_s0 + $0xc8] sm:$0xff] }
  0x14   :  { %1683 = vmatmul.mubr.msk.f32.gmra.mrb[2].mxu0 %vm87_vm0, %v20_v15  ;;  %v43_v60 = vld [vmem:[%s4319_s0 + $0xd0] sm:$0xff]  ;;  %v74_v61 = vld [vmem:[%s4319_s0 + $0x1c8] sm:$0xff]  ;;  %v44_v63 = vld [vmem:[%s4319_s0 + $0xd8] sm:$0xff] }
  0x15   :  { %1685 = vmatprep.mubr.msk.f32.mxu0 %vm87_vm0, %v21_v16  ;;  %1731 = vmatmul.mubr.msk.f32.gmra.mrb[2].mxu1 %vm87_vm0, %v52_v17  ;;  %v75_v62 = vld [vmem:[%s4319_s0 + $0x1d0] sm:$0xff]  ;;  %v45_v0 = vld [vmem:[%s4319_s0 + $0xe0] sm:$0xff]  ;;  %v76_v1 = vld [vmem:[%s4319_s0 + $0x1d8] sm:$0xff] }
  0x16   :  { %1733 = vmatprep.mubr.msk.f32.mxu1 %vm87_vm0, %v53_v18  ;;  %v77_v2 = vld [vmem:[%s4319_s0 + $0x1e0] sm:$0xff]  ;;  %v46_v3 = vld [vmem:[%s4319_s0 + $0xe8] sm:$0xff]  ;;  %v47_v4 = vld [vmem:[%s4319_s0 + $0xf0] sm:$0xff] }
  0x17   :  { %v78_v5 = vld [vmem:[%s4319_s0 + $0x1e8] sm:$0xff]  ;;  %v79_v6 = vld [vmem:[%s4319_s0 + $0x1f0] sm:$0xff]  ;;  %v48_v7 = vld [vmem:[%s4319_s0 + $0xf8] sm:$0xff] }
  0x18   :  { %1686 = vmatmul.mubr.msk.f32.gmra.mrb[4].mxu0 %vm87_vm0, %v22_v19  ;;  %v80_v8 = vld [vmem:[%s4319_s0 + $0x1f8] sm:$0xff] }
  0x19   :  { %1688 = vmatprep.mubr.msk.f32.mxu0 %vm87_vm0, %v23_v20  ;;  %1734 = vmatmul.mubr.msk.f32.gmra.mrb[4].mxu1 %vm87_vm0, %v54_v21 }
  0x1a   :  { %1736 = vmatprep.mubr.msk.f32.mxu1 %vm87_vm0, %v55_v22 }
  0x1c   :  { %1689 = vmatmul.mubr.msk.f32.gmra.mrb[6].mxu0 %vm87_vm0, %v24_v23 }
  0x1d   :  { %1691 = vmatprep.mubr.msk.f32.mxu0 %vm87_vm0, %v25_v24  ;;  %1737 = vmatmul.mubr.msk.f32.gmra.mrb[6].mxu1 %vm87_vm0, %v56_v25 }
  0x1e   :  { %1739 = vmatprep.mubr.msk.f32.mxu1 %vm87_vm0, %v57_v26 }
  0x20   :  { %1692 = vmatmul.mubr.msk.f32.gmra.mrb[8].mxu0 %vm87_vm0, %v26_v27 }
  0x21   :  { %1694 = vmatprep.mubr.msk.f32.mxu0 %vm87_vm0, %v27_v28  ;;  %1740 = vmatmul.mubr.msk.f32.gmra.mrb[8].mxu1 %vm87_vm0, %v58_v29 }
  0x22   :  { %1742 = vmatprep.mubr.msk.f32.mxu1 %vm87_vm0, %v59_v30 }
  0x24   :  { %1695 = vmatmul.mubr.msk.f32.gmra.mrb[10].mxu0 %vm87_vm0, %v28_v31 }
  0x25   :  { %1697 = vmatprep.mubr.msk.f32.mxu0 %vm87_vm0, %v29_v32  ;;  %1743 = vmatmul.mubr.msk.f32.gmra.mrb[10].mxu1 %vm87_vm0, %v60_v33 }
  0x26   :  { %1745 = vmatprep.mubr.msk.f32.mxu1 %vm87_vm0, %v61_v34 }
  0x28   :  { %1698 = vmatmul.mubr.msk.f32.gmra.mrb[12].mxu0 %vm87_vm0, %v30_v35 }
  0x29   :  { %1700 = vmatprep.mubr.msk.f32.mxu0 %vm87_vm0, %v31_v36  ;;  %1746 = vmatmul.mubr.msk.f32.gmra.mrb[12].mxu1 %vm87_vm0, %v62_v37 }
  0x2a   :  { %1748 = vmatprep.mubr.msk.f32.mxu1 %vm87_vm0, %v63_v38 }
  0x2c   :  { %1701 = vmatmul.mubr.msk.f32.gmra.mrb[14].mxu0 %vm87_vm0, %v32_v39 }
  0x2d   :  { %1703 = vmatprep.mubr.msk.f32.mxu0 %vm87_vm0, %v33_v40  ;;  %1749 = vmatmul.mubr.msk.f32.gmra.mrb[14].mxu1 %vm87_vm0, %v64_v41 }
  0x2e   :  { %1751 = vmatprep.mubr.msk.f32.mxu1 %vm87_vm0, %v65_v42 }
  0x30   :  { %1704 = vmatmul.mubr.msk.f32.gmra.mrb[16].mxu0 %vm87_vm0, %v34_v43 }
  0x31   :  { %1706 = vmatprep.mubr.msk.f32.mxu0 %vm87_vm0, %v35_v44  ;;  %1752 = vmatmul.mubr.msk.f32.gmra.mrb[16].mxu1 %vm87_vm0, %v66_v45 }
  0x32   :  { %1754 = vmatprep.mubr.msk.f32.mxu1 %vm87_vm0, %v67_v46 }
  0x34   :  { %1707 = vmatmul.mubr.msk.f32.gmra.mrb[18].mxu0 %vm87_vm0, %v36_v47 }
  0x35   :  { %1709 = vmatprep.mubr.msk.f32.mxu0 %vm87_vm0, %v37_v48  ;;  %1755 = vmatmul.mubr.msk.f32.gmra.mrb[18].mxu1 %vm87_vm0, %v68_v49 }
  0x36   :  { %1757 = vmatprep.mubr.msk.f32.mxu1 %vm87_vm0, %v69_v50 }
  0x38   :  { %1710 = vmatmul.mubr.msk.f32.gmra.mrb[20].mxu0 %vm87_vm0, %v38_v51 }
  0x39   :  { %1712 = vmatprep.mubr.msk.f32.mxu0 %vm87_vm0, %v39_v52  ;;  %1758 = vmatmul.mubr.msk.f32.gmra.mrb[20].mxu1 %vm87_vm0, %v70_v53 }
  0x3a   :  { %1760 = vmatprep.mubr.msk.f32.mxu1 %vm87_vm0, %v71_v54 }
  0x3c   :  { %1713 = vmatmul.mubr.msk.f32.gmra.mrb[22].mxu0 %vm87_vm0, %v40_v55 }
  0x3d   :  { %1715 = vmatprep.mubr.msk.f32.mxu0 %vm87_vm0, %v41_v56  ;;  %1761 = vmatmul.mubr.msk.f32.gmra.mrb[22].mxu1 %vm87_vm0, %v72_v57 }
  0x3e   :  { %1763 = vmatprep.mubr.msk.f32.mxu1 %vm87_vm0, %v73_v58 }
  0x40   :  { %1716 = vmatmul.mubr.msk.f32.gmra.mrb[24].mxu0 %vm87_vm0, %v42_v59 }
  0x41   :  { %1718 = vmatprep.mubr.msk.f32.mxu0 %vm87_vm0, %v43_v60  ;;  %1764 = vmatmul.mubr.msk.f32.gmra.mrb[24].mxu1 %vm87_vm0, %v74_v61 }
  0x42   :  { %1766 = vmatprep.mubr.msk.f32.mxu1 %vm87_vm0, %v75_v62 }
  0x44   :  { %1719 = vmatmul.mubr.msk.f32.gmra.mrb[26].mxu0 %vm87_vm0, %v44_v63 }
  0x45   :  { %1721 = vmatprep.mubr.msk.f32.mxu0 %vm87_vm0, %v45_v0  ;;  %1767 = vmatmul.mubr.msk.f32.gmra.mrb[26].mxu1 %vm87_vm0, %v76_v1 }
  0x46   :  { %1769 = vmatprep.mubr.msk.f32.mxu1 %vm87_vm0, %v77_v2 }
  0x48   :  { %1722 = vmatmul.mubr.msk.f32.gmra.mrb[28].mxu0 %vm87_vm0, %v46_v3 }
  0x49   :  { %1724 = vmatprep.mubr.msk.f32.mxu0 %vm87_vm0, %v47_v4  ;;  %1770 = vmatmul.mubr.msk.f32.gmra.mrb[28].mxu1 %vm87_vm0, %v78_v5 }
  0x4a   :  { %1772 = vmatprep.mubr.msk.f32.mxu1 %vm87_vm0, %v79_v6 }
  0x4c   :  { %1725 = vmatmul.mubr.msk.f32.gmra.mrb[30].mxu0 %vm87_vm0, %v48_v7 }
  0x4d   :  { %1773 = vmatmul.mubr.msk.f32.gmra.mrb[30].mxu1 %vm87_vm0, %v80_v8 }
  0xe3   :  { %v2094_v9 = vpop.f32.mrb[0].mxu0 }
  0xe4   :  { %v667_v10 = vsel %vm665_vm1, %v2094_v9, 0.0  ;;  %v2098_v11 = vpop.f32.mrb[1].mxu0  ;;  %v2100_v12 = vpop.f32.mrb[0].mxu1 }
  0xe5   :  { %v666_v13 = vsel %vm665_vm1, %v2098_v11, 0.0  ;;  %v2104_v14 = vpop.f32.mrb[1].mxu1 }
  0xe6   :  { %v668_v15 = vadd.f32 %v667_v10, %v666_v13 }
  0xe7   :  { %v2106_v16 = vpop.f32.mrb[2].mxu0 }
  0xe8   :  { %v2108_v17 = vpop.f32.mrb[3].mxu0  ;;  %v2110_v18 = vpop.f32.mrb[2].mxu1  ;;  %v671_v22 = vsel %vm665_vm1, %v2106_v16, 0.0 }
  0xe9   :  { %v669_v19 = vsel %vm665_vm1, %v2108_v17, 0.0  ;;  %v2114_v20 = vpop.f32.mrb[3].mxu1 }
  0xea   :  { %v670_v21 = vadd.f32 %v669_v19, %v668_v15 }
  0xeb   :  { %v2118_v23 = vpop.f32.mrb[4].mxu0 }
  0xec   :  { %v2120_v24 = vpop.f32.mrb[5].mxu0  ;;  %v672_v25 = vadd.f32 %v671_v22, %v670_v21  ;;  %v2122_v26 = vpop.f32.mrb[4].mxu1  ;;  %v675_v30 = vsel %vm665_vm1, %v2118_v23, 0.0 }
  0xed   :  { %v673_v27 = vsel %vm665_vm1, %v2120_v24, 0.0  ;;  %v2126_v28 = vpop.f32.mrb[5].mxu1 }
  0xee   :  { %v674_v29 = vadd.f32 %v673_v27, %v672_v25 }
  0xef   :  { %v2130_v31 = vpop.f32.mrb[6].mxu0 }
  0xf0   :  { %v2132_v32 = vpop.f32.mrb[7].mxu0  ;;  %v676_v33 = vadd.f32 %v675_v30, %v674_v29  ;;  %v2134_v34 = vpop.f32.mrb[6].mxu1  ;;  %v679_v38 = vsel %vm665_vm1, %v2130_v31, 0.0 }
  0xf1   :  { %v677_v35 = vsel %vm665_vm1, %v2132_v32, 0.0  ;;  %v2138_v36 = vpop.f32.mrb[7].mxu1 }
  0xf2   :  { %v678_v37 = vadd.f32 %v677_v35, %v676_v33 }
  0xf3   :  { %v2142_v39 = vpop.f32.mrb[8].mxu0 }
  0xf4   :  { %v2144_v40 = vpop.f32.mrb[9].mxu0  ;;  %v680_v41 = vadd.f32 %v679_v38, %v678_v37  ;;  %v2146_v42 = vpop.f32.mrb[8].mxu1  ;;  %v683_v46 = vsel %vm665_vm1, %v2142_v39, 0.0 }
  0xf5   :  { %v681_v43 = vsel %vm665_vm1, %v2144_v40, 0.0  ;;  %v2150_v44 = vpop.f32.mrb[9].mxu1 }
  0xf6   :  { %v682_v45 = vadd.f32 %v681_v43, %v680_v41 }
  0xf7   :  { %v2154_v47 = vpop.f32.mrb[10].mxu0 }
  0xf8   :  { %v2156_v48 = vpop.f32.mrb[11].mxu0  ;;  %v684_v49 = vadd.f32 %v683_v46, %v682_v45  ;;  %v2158_v50 = vpop.f32.mrb[10].mxu1  ;;  %v687_v54 = vsel %vm665_vm1, %v2154_v47, 0.0 }
  0xf9   :  { %v685_v51 = vsel %vm665_vm1, %v2156_v48, 0.0  ;;  %v2162_v52 = vpop.f32.mrb[11].mxu1 }
  0xfa   :  { %v686_v53 = vadd.f32 %v685_v51, %v684_v49 }
  0xfb   :  { %v2166_v55 = vpop.f32.mrb[12].mxu0 }
  0xfc   :  { %v2168_v56 = vpop.f32.mrb[13].mxu0  ;;  %v688_v57 = vadd.f32 %v687_v54, %v686_v53  ;;  %v2170_v58 = vpop.f32.mrb[12].mxu1  ;;  %v691_v62 = vsel %vm665_vm1, %v2166_v55, 0.0 }
  0xfd   :  { %v689_v59 = vsel %vm665_vm1, %v2168_v56, 0.0  ;;  %v2174_v60 = vpop.f32.mrb[13].mxu1 }
  0xfe   :  { %v690_v61 = vadd.f32 %v689_v59, %v688_v57 }
  0xff   :  { %v2178_v63 = vpop.f32.mrb[14].mxu0 }
 0x100   :  { %v2180_v0 = vpop.f32.mrb[15].mxu0  ;;  %v692_v1 = vadd.f32 %v691_v62, %v690_v61  ;;  %v2182_v2 = vpop.f32.mrb[14].mxu1  ;;  %v695_v6 = vsel %vm665_vm1, %v2178_v63, 0.0 }
 0x101   :  { %v693_v3 = vsel %vm665_vm1, %v2180_v0, 0.0  ;;  %v2186_v4 = vpop.f32.mrb[15].mxu1 }
 0x102   :  { %v694_v5 = vadd.f32 %v693_v3, %v692_v1 }
 0x103   :  { %v2190_v7 = vpop.f32.mrb[16].mxu0 }
 0x104   :  { %v2192_v8 = vpop.f32.mrb[17].mxu0  ;;  %v696_v10 = vadd.f32 %v695_v6, %v694_v5  ;;  %v2194_v13 = vpop.f32.mrb[16].mxu1  ;;  %v699_v22 = vsel %vm665_vm1, %v2190_v7, 0.0 }
 0x105   :  { %v697_v15 = vsel %vm665_vm1, %v2192_v8, 0.0  ;;  %v2198_v19 = vpop.f32.mrb[17].mxu1 }
 0x106   :  { %v698_v21 = vadd.f32 %v697_v15, %v696_v10 }
 0x107   :  { %v2202_v25 = vpop.f32.mrb[18].mxu0 }
 0x108   :  { %4387 = vst [vmem:[#allocation2_spill] sm:$0xff] %v2202_v25  ;;  %v2204_v27 = vpop.f32.mrb[19].mxu0  ;;  %v700_v29 = vadd.f32 %v699_v22, %v698_v21  ;;  %v2206_v30 = vpop.f32.mrb[18].mxu1  ;;  %v703_v38 = vsel %vm665_vm1, %v2202_v25, 0.0 }
 0x109   :  { %v701_v33 = vsel %vm665_vm1, %v2204_v27, 0.0  ;;  %v2210_v35 = vpop.f32.mrb[19].mxu1 }
 0x10a   :  { %v702_v37 = vadd.f32 %v701_v33, %v700_v29 }
 0x10b   :  { %v2214_v41 = vpop.f32.mrb[20].mxu0 }
 0x10c   :  { %4388 = vst [vmem:[#allocation3_spill] sm:$0xff] %v2214_v41  ;;  %v2216_v43 = vpop.f32.mrb[21].mxu0  ;;  %v704_v45 = vadd.f32 %v703_v38, %v702_v37  ;;  %v2218_v46 = vpop.f32.mrb[20].mxu1  ;;  %v707_v54 = vsel %vm665_vm1, %v2214_v41, 0.0 }
 0x10d   :  { %4389 = vst [vmem:[#allocation4_spill] sm:$0xff] %v2216_v43  ;;  %v705_v49 = vsel %vm665_vm1, %v2216_v43, 0.0  ;;  %v2222_v51 = vpop.f32.mrb[21].mxu1  ;;  %v731_v43 = vsel %vm665_vm1, %v2100_v12, 0.0 }
 0x10e   :  { %v706_v53 = vadd.f32 %v705_v49, %v704_v45 }
 0x10f   :  { %v2226_v57 = vpop.f32.mrb[22].mxu0 }
 0x110   :  { %4390 = vst [vmem:[#allocation5_spill] sm:$0xff] %v2226_v57  ;;  %v2228_v59 = vpop.f32.mrb[23].mxu0  ;;  %v708_v61 = vadd.f32 %v707_v54, %v706_v53  ;;  %v2230_v62 = vpop.f32.mrb[22].mxu1  ;;  %v711_v6 = vsel %vm665_vm1, %v2226_v57, 0.0 }
 0x111   :  { %4391 = vst [vmem:[#allocation6_spill] sm:$0xff] %v2228_v59  ;;  %v709_v1 = vsel %vm665_vm1, %v2228_v59, 0.0  ;;  %v2234_v3 = vpop.f32.mrb[23].mxu1 }
 0x112   :  { %v710_v5 = vadd.f32 %v709_v1, %v708_v61 }
 0x113   :  { %v2238_v10 = vpop.f32.mrb[24].mxu0 }
 0x114   :  { %4392 = vst [vmem:[#allocation7_spill] sm:$0xff] %v2238_v10  ;;  %v2240_v15 = vpop.f32.mrb[25].mxu0  ;;  %v712_v21 = vadd.f32 %v711_v6, %v710_v5  ;;  %v2242_v22 = vpop.f32.mrb[24].mxu1  ;;  %v715_v38 = vsel %vm665_vm1, %v2238_v10, 0.0 }
 0x115   :  { %4393 = vst [vmem:[#allocation8_spill] sm:$0xff] %v2240_v15  ;;  %4394 = vst [vmem:[#allocation9_spill] sm:$0xff] %v2242_v22  ;;  %v713_v29 = vsel %vm665_vm1, %v2240_v15, 0.0  ;;  %v2246_v33 = vpop.f32.mrb[25].mxu1 }
 0x116   :  { %v714_v37 = vadd.f32 %v713_v29, %v712_v21 }
 0x117   :  { %v2250_v45 = vpop.f32.mrb[26].mxu0 }
 0x118   :  { %4395 = vst [vmem:[#allocation10_spill] sm:$0xff] %v2250_v45  ;;  %v2252_v49 = vpop.f32.mrb[27].mxu0  ;;  %v716_v53 = vadd.f32 %v715_v38, %v714_v37  ;;  %v2254_v54 = vpop.f32.mrb[26].mxu1  ;;  %v719_v6 = vsel %vm665_vm1, %v2250_v45, 0.0 }
 0x119   :  { %4396 = vst [vmem:[#allocation11_spill] sm:$0xff] %v2252_v49  ;;  %4397 = vst [vmem:[#allocation12_spill] sm:$0xff] %v2254_v54  ;;  %v717_v61 = vsel %vm665_vm1, %v2252_v49, 0.0  ;;  %v2258_v1 = vpop.f32.mrb[27].mxu1 }
 0x11a   :  { %4398 = vst [vmem:[#allocation13_spill] sm:$0xff] %v2258_v1  ;;  %v718_v5 = vadd.f32 %v717_v61, %v716_v53 }
 0x11b   :  { %v2262_v21 = vpop.f32.mrb[28].mxu0 }
 0x11c   :  { %4399 = vst [vmem:[#allocation14_spill] sm:$0xff] %v2262_v21  ;;  %v2264_v29 = vpop.f32.mrb[29].mxu0  ;;  %v720_v10 = vadd.f32 %v719_v6, %v718_v5  ;;  %v2266_v15 = vpop.f32.mrb[28].mxu1  ;;  %v723_v49 = vsel %vm665_vm1, %v2262_v21, 0.0 }
 0x11d   :  { %4400 = vst [vmem:[#allocation15_spill] sm:$0xff] %v2264_v29  ;;  %v721_v37 = vsel %vm665_vm1, %v2264_v29, 0.0  ;;  %v2270_v38 = vpop.f32.mrb[29].mxu1 }
 0x11e   :  { %4401 = vst [vmem:[#allocation16_spill] sm:$0xff] %v2270_v38  ;;  %v722_v57 = vadd.f32 %v721_v37, %v720_v10  ;;  %v729_v10 = vsel %vm665_vm1, %v2104_v14, 0.0 }
 0x11f   :  { %v2274_v53 = vpop.f32.mrb[30].mxu0 }
 0x120   :  { %4402 = vst [vmem:[#allocation17_spill] sm:$0xff] %v2274_v53  ;;  %v2276_v61 = vpop.f32.mrb[31].mxu0  ;;  %v724_v45 = vadd.f32 %v723_v49, %v722_v57  ;;  %v2278_v59 = vpop.f32.mrb[30].mxu1  ;;  %v727_v29 = vsel %vm665_vm1, %v2274_v53, 0.0  ;;  %v733_v57 = vsel %vm665_vm1, %v2114_v20, 0.0 }
 0x121   :  { %4403 = vst [vmem:[#allocation18_spill] sm:$0xff] %v2276_v61  ;;  %v725_v5 = vsel %vm665_vm1, %v2276_v61, 0.0  ;;  %v2282_v6 = vpop.f32.mrb[31].mxu1  ;;  %v735_v61 = vsel %vm665_vm1, %v2110_v18, 0.0 }
 0x122   :  { %v726_v41 = vadd.f32 %v725_v5, %v724_v45  ;;  %v737_v45 = vsel %vm665_vm1, %v2126_v28, 0.0 }
 0x124   :  { %v728_v37 = vadd.f32 %v727_v29, %v726_v41  ;;  %v739_v41 = vsel %vm665_vm1, %v2122_v26, 0.0  ;;  %v741_v29 = vsel %vm665_vm1, %v2138_v36, 0.0 }
 0x126   :  { %v730_v21 = vadd.f32 %v729_v10, %v728_v37 }
 0x128   :  { %v732_v49 = vadd.f32 %v731_v43, %v730_v21  ;;  %v743_v43 = vsel %vm665_vm1, %v2134_v34, 0.0  ;;  %v745_v21 = vsel %vm665_vm1, %v2150_v44, 0.0 }
 0x12a   :  { %v734_v25 = vadd.f32 %v733_v57, %v732_v49 }
 0x12c   :  { %v736_v5 = vadd.f32 %v735_v61, %v734_v25  ;;  %v747_v25 = vsel %vm665_vm1, %v2146_v42, 0.0  ;;  %v749_v61 = vsel %vm665_vm1, %v2162_v52, 0.0 }
 0x12e   :  { %v738_v53 = vadd.f32 %v737_v45, %v736_v5 }
 0x130   :  { %v740_v10 = vadd.f32 %v739_v41, %v738_v53  ;;  %v751_v53 = vsel %vm665_vm1, %v2158_v50, 0.0  ;;  %v753_v41 = vsel %vm665_vm1, %v2174_v60, 0.0 }
 0x132   :  { %v742_v37 = vadd.f32 %v741_v29, %v740_v10 }
 0x134   :  { %v744_v57 = vadd.f32 %v743_v43, %v742_v37  ;;  %v755_v37 = vsel %vm665_vm1, %v2170_v58, 0.0  ;;  %v757_v43 = vsel %vm665_vm1, %v2186_v4, 0.0 }
 0x136   :  { %v746_v49 = vadd.f32 %v745_v21, %v744_v57 }
 0x138   :  { %v748_v45 = vadd.f32 %v747_v25, %v746_v49  ;;  %v759_v49 = vsel %vm665_vm1, %v2182_v2, 0.0  ;;  %v761_v25 = vsel %vm665_vm1, %v2198_v19, 0.0 }
 0x13a   :  { %v750_v5 = vadd.f32 %v749_v61, %v748_v45 }
 0x13c   :  { %v752_v29 = vadd.f32 %v751_v53, %v750_v5  ;;  %v763_v5 = vsel %vm665_vm1, %v2194_v13, 0.0  ;;  %v765_v53 = vsel %vm665_vm1, %v2210_v35, 0.0 }
 0x13e   :  { %v754_v10 = vadd.f32 %v753_v41, %v752_v29 }
 0x140   :  { %v756_v21 = vadd.f32 %v755_v37, %v754_v10  ;;  %v767_v10 = vsel %vm665_vm1, %v2206_v30, 0.0  ;;  %v769_v37 = vsel %vm665_vm1, %v2222_v51, 0.0 }
 0x142   :  { %v758_v57 = vadd.f32 %v757_v43, %v756_v21 }
 0x144   :  { %v760_v61 = vadd.f32 %v759_v49, %v758_v57  ;;  %v771_v57 = vsel %vm665_vm1, %v2218_v46, 0.0  ;;  %v773_v49 = vsel %vm665_vm1, %v2234_v3, 0.0 }
 0x146   :  { %v762_v45 = vadd.f32 %v761_v25, %v760_v61 }
 0x148   :  { %v764_v41 = vadd.f32 %v763_v5, %v762_v45  ;;  %v775_v45 = vsel %vm665_vm1, %v2230_v62, 0.0  ;;  %v777_v5 = vsel %vm665_vm1, %v2246_v33, 0.0 }
 0x14a   :  { %v766_v29 = vadd.f32 %v765_v53, %v764_v41 }
 0x14c   :  { %v768_v43 = vadd.f32 %v767_v10, %v766_v29  ;;  %v779_v29 = vsel %vm665_vm1, %v2242_v22, 0.0  ;;  %v781_v10 = vsel %vm665_vm1, %v2258_v1, 0.0 }
 0x14e   :  { %v770_v21 = vadd.f32 %v769_v37, %v768_v43 }
 0x150   :  { %v772_v25 = vadd.f32 %v771_v57, %v770_v21  ;;  %v783_v21 = vsel %vm665_vm1, %v2254_v54, 0.0  ;;  %v785_v57 = vsel %vm665_vm1, %v2270_v38, 0.0 }
 0x152   :  { %v774_v61 = vadd.f32 %v773_v49, %v772_v25 }
 0x154   :  { %v776_v53 = vadd.f32 %v775_v45, %v774_v61  ;;  %v787_v61 = vsel %vm665_vm1, %v2266_v15, 0.0  ;;  %v789_v45 = vsel %vm665_vm1, %v2282_v6, 0.0 }
 0x156   :  { %v778_v41 = vadd.f32 %v777_v5, %v776_v53 }
 0x158   :  { %v780_v37 = vadd.f32 %v779_v29, %v778_v41  ;;  %v791_v41 = vsel %vm665_vm1, %v2278_v59, 0.0 }
 0x15a   :  { %v782_v43 = vadd.f32 %v781_v10, %v780_v37 }
 0x15c   :  { %v784_v49 = vadd.f32 %v783_v21, %v782_v43 }
 0x15e   :  { %v786_v25 = vadd.f32 %v785_v57, %v784_v49 }
 0x160   :  { %v788_v5 = vadd.f32 %v787_v61, %v786_v25  ;;  %v4412_v61 = vld [vmem:[#allocation6_spill] sm:$0xff] }
 0x162   :  { %v790_v53 = vadd.f32 %v789_v45, %v788_v5  ;;  %v4414_v45 = vld [vmem:[#allocation5_spill] sm:$0xff]  ;;  %v4415_v5 = vld [vmem:[#allocation8_spill] sm:$0xff] }
 0x164   :  { %v792_v29 = vadd.f32 %v791_v41, %v790_v53  ;;  %v4417_v41 = vld [vmem:[#allocation7_spill] sm:$0xff] }
 0x166   :  { %v793_v10 = vrot.slane %v792_v29, 4 }
 0x168   :  { %v794_v37 = vadd.f32 %v793_v10, %v792_v29  ;;  %v4419_v10 = vld [vmem:[#allocation11_spill] sm:$0xff] }
 0x16a   :  { %v795_v54 = vrot.slane %v794_v37, 2 }
 0x16c   :  { %v796_v1 = vadd.f32 %v795_v54, %v794_v37  ;;  %v4408_v54 = vld [vmem:[#allocation2_spill] sm:$0xff] }
 0x16e   :  { %v797_v22 = vrot.slane %v796_v1, 1 }
 0x170   :  { %v798_v38 = vadd.f32 %v797_v22, %v796_v1  ;;  %v4409_v1 = vld [vmem:[#allocation4_spill] sm:$0xff] }
 0x172   :  { %v2350_v43 = vmul.f32 0.001953125, %v798_v38  ;;  %v4410_v38 = vld [vmem:[#allocation3_spill] sm:$0xff] }
 0x174   :  { %v2354_v21 = vsub.f32 %v2098_v11, %v2350_v43  ;;  %v2358_v57 = vsub.f32 %v2094_v9, %v2350_v43  ;;  %v2362_v49 = vsub.f32 %v2108_v17, %v2350_v43  ;;  %v2366_v25 = vsub.f32 %v2106_v16, %v2350_v43 }
 0x175   :  { %v2370_v22 = vsub.f32 %v2120_v24, %v2350_v43  ;;  %v2374_v11 = vsub.f32 %v2118_v23, %v2350_v43  ;;  %v2378_v9 = vsub.f32 %v2132_v32, %v2350_v43  ;;  %v2382_v17 = vsub.f32 %v2130_v31, %v2350_v43 }
 0x176   :  { %4404 = vst [vmem:[#allocation19_spill] sm:$0xff] %v2354_v21  ;;  %4405 = vst [vmem:[#allocation20_spill] sm:$0xff] %v2358_v57  ;;  %v2386_v16 = vsub.f32 %v2144_v40, %v2350_v43  ;;  %v2390_v24 = vsub.f32 %v2142_v39, %v2350_v43  ;;  %v2394_v23 = vsub.f32 %v2156_v48, %v2350_v43 }
 0x177   :  { %4406 = vst [vmem:[#allocation21_spill] sm:$0xff] %v2362_v49  ;;  %4407 = vst [vmem:[#allocation22_spill] sm:$0xff] %v2366_v25  ;;  %v2398_v32 = vsub.f32 %v2154_v47, %v2350_v43  ;;  %v2402_v31 = vsub.f32 %v2168_v56, %v2350_v43  ;;  %v2406_v40 = vsub.f32 %v2166_v55, %v2350_v43 }
 0x178   :  { %v2410_v39 = vsub.f32 %v2180_v0, %v2350_v43  ;;  %v2414_v48 = vsub.f32 %v2178_v63, %v2350_v43  ;;  %v2418_v47 = vsub.f32 %v2192_v8, %v2350_v43  ;;  %v2422_v56 = vsub.f32 %v2190_v7, %v2350_v43 }
 0x179   :  { %v2426_v55 = vsub.f32 %v2204_v27, %v2350_v43  ;;  %v2430_v0 = vsub.f32 %v4408_v54, %v2350_v43  ;;  %v2434_v63 = vsub.f32 %v4409_v1, %v2350_v43  ;;  %v2438_v8 = vsub.f32 %v4410_v38, %v2350_v43  ;;  %v4420_v54 = vld [vmem:[#allocation10_spill] sm:$0xff]  ;;  %v4421_v38 = vld [vmem:[#allocation15_spill] sm:$0xff] }
 0x17a   :  { %v2442_v7 = vsub.f32 %v4412_v61, %v2350_v43  ;;  %v2446_v27 = vsub.f32 %v4414_v45, %v2350_v43  ;;  %v2450_v53 = vsub.f32 %v4415_v5, %v2350_v43  ;;  %v2454_v29 = vsub.f32 %v4417_v41, %v2350_v43  ;;  %v4422_v45 = vld [vmem:[#allocation14_spill] sm:$0xff] }
 0x17b   :  { %4411 = vst [vmem:[#allocation2_spill] sm:$0xff] %v2438_v8  ;;  %v2458_v37 = vsub.f32 %v4419_v10, %v2350_v43  ;;  %v2462_v1 = vsub.f32 %v4420_v54, %v2350_v43  ;;  %v2466_v61 = vsub.f32 %v4421_v38, %v2350_v43  ;;  %v2470_v5 = vsub.f32 %v4422_v45, %v2350_v43 }
 0x17c   :  { %4413 = vst [vmem:[#allocation4_spill] sm:$0xff] %v2442_v7  ;;  %4416 = vst [vmem:[#allocation3_spill] sm:$0xff] %v2450_v53  ;;  %v4423_v53 = vld [vmem:[#allocation18_spill] sm:$0xff]  ;;  %v2482_v54 = vsub.f32 %v2104_v14, %v2350_v43  ;;  %v2486_v38 = vsub.f32 %v2100_v12, %v2350_v43  ;;  %v2490_v45 = vsub.f32 %v2114_v20, %v2350_v43 }
 0x17d   :  { %4418 = vst [vmem:[#allocation6_spill] sm:$0xff] %v2454_v29  ;;  %v2474_v41 = vsub.f32 %v4423_v53, %v2350_v43  ;;  %v4424_v29 = vld [vmem:[#allocation17_spill] sm:$0xff]  ;;  %v2494_v53 = vsub.f32 %v2110_v18, %v2350_v43  ;;  %v2502_v14 = vsub.f32 %v2122_v26, %v2350_v43  ;;  %v2506_v12 = vsub.f32 %v2138_v36, %v2350_v43 }
 0x17e   :  { %v2478_v10 = vsub.f32 %v4424_v29, %v2350_v43  ;;  %v2498_v29 = vsub.f32 %v2126_v28, %v2350_v43  ;;  %v2510_v20 = vsub.f32 %v2134_v34, %v2350_v43  ;;  %v2514_v18 = vsub.f32 %v2150_v44, %v2350_v43 }
 0x17f   :  { %v2518_v28 = vsub.f32 %v2146_v42, %v2350_v43  ;;  %v2522_v26 = vsub.f32 %v2162_v52, %v2350_v43  ;;  %v2526_v36 = vsub.f32 %v2158_v50, %v2350_v43  ;;  %v2530_v34 = vsub.f32 %v2174_v60, %v2350_v43 }
 0x180   :  { %v2534_v44 = vsub.f32 %v2170_v58, %v2350_v43  ;;  %v2538_v42 = vsub.f32 %v2186_v4, %v2350_v43  ;;  %v2542_v52 = vsub.f32 %v2182_v2, %v2350_v43  ;;  %v2546_v50 = vsub.f32 %v2198_v19, %v2350_v43 }
 0x181   :  { %v2550_v60 = vsub.f32 %v2194_v13, %v2350_v43  ;;  %v2554_v58 = vsub.f32 %v2210_v35, %v2350_v43  ;;  %v2558_v4 = vsub.f32 %v2206_v30, %v2350_v43  ;;  %v2562_v2 = vsub.f32 %v2222_v51, %v2350_v43 }
 0x182   :  { %4425 = vst [vmem:[#allocation5_spill] sm:$0xff] %v2546_v50  ;;  %v2566_v19 = vsub.f32 %v2218_v46, %v2350_v43  ;;  %v2570_v13 = vsub.f32 %v2234_v3, %v2350_v43  ;;  %v2574_v35 = vsub.f32 %v2230_v62, %v2350_v43  ;;  %v2578_v30 = vsub.f32 %v2246_v33, %v2350_v43 }
 0x183   :  { %4426 = vst [vmem:[#allocation8_spill] sm:$0xff] %v2550_v60  ;;  %4427 = vst [vmem:[#allocation7_spill] sm:$0xff] %v2554_v58  ;;  %v2598_v33 = vsub.f32 %v2266_v15, %v2350_v43  ;;  %v868_v15 = vmul.f32 %v2366_v25, %v2366_v25  ;;  %v871_v25 = vmul.f32 %v2378_v9, %v2378_v9 }
 0x184   :  { %4428 = vst [vmem:[#allocation11_spill] sm:$0xff] %v2558_v4  ;;  %4429 = vst [vmem:[#allocation10_spill] sm:$0xff] %v2562_v2  ;;  %v4434_v4 = vld [vmem:[#allocation9_spill] sm:$0xff] }
 0x185   :  { %4430 = vst [vmem:[#allocation15_spill] sm:$0xff] %v2566_v19  ;;  %4431 = vst [vmem:[#allocation14_spill] sm:$0xff] %v2570_v13  ;;  %v2582_v51 = vsub.f32 %v4434_v4, %v2350_v43  ;;  %v4436_v2 = vld [vmem:[#allocation13_spill] sm:$0xff]  ;;  %v4438_v19 = vld [vmem:[#allocation12_spill] sm:$0xff]  ;;  %v2602_v4 = vsub.f32 %v2282_v6, %v2350_v43 }
 0x186   :  { %4432 = vst [vmem:[#allocation18_spill] sm:$0xff] %v2574_v35  ;;  %4433 = vst [vmem:[#allocation17_spill] sm:$0xff] %v2578_v30  ;;  %v2586_v46 = vsub.f32 %v4436_v2, %v2350_v43  ;;  %v2590_v3 = vsub.f32 %v4438_v19, %v2350_v43  ;;  %v4440_v13 = vld [vmem:[#allocation16_spill] sm:$0xff]  ;;  %v2606_v2 = vsub.f32 %v2278_v59, %v2350_v43 }
 0x187   :  { %4435 = vst [vmem:[#allocation9_spill] sm:$0xff] %v2582_v51  ;;  %v2594_v62 = vsub.f32 %v4440_v13, %v2350_v43  ;;  %4442 = vst [vmem:[#allocation23_spill] sm:$0xff] %v2598_v33  ;;  %v865_v19 = vmul.f32 %v2354_v21, %v2354_v21  ;;  %v867_v13 = vmul.f32 %v2362_v49, %v2362_v49 }
 0x188   :  { %4437 = vst [vmem:[#allocation13_spill] sm:$0xff] %v2586_v46  ;;  %4439 = vst [vmem:[#allocation12_spill] sm:$0xff] %v2590_v3  ;;  %v866_v3 = vmul.f32 %v2358_v57, %v2358_v57  ;;  %v869_v59 = vmul.f32 %v2370_v22, %v2370_v22  ;;  %v870_v57 = vmul.f32 %v2374_v11, %v2374_v11 }
 0x189   :  { %4441 = vst [vmem:[#allocation16_spill] sm:$0xff] %v2594_v62  ;;  %4443 = vst [vmem:[#allocation24_spill] sm:$0xff] %v2602_v4  ;;  %v929_v33 = vsel %vm665_vm1, %v865_v19, 0.0  ;;  %v932_v43 = vsel %vm665_vm1, %v867_v13, 0.0  ;;  %v940_v13 = vsel %vm665_vm1, %v871_v25, 0.0  ;;  %v877_v25 = vmul.f32 %v2402_v31, %v2402_v31 }
 0x18a   :  { %4444 = vst [vmem:[#allocation25_spill] sm:$0xff] %v2606_v2  ;;  %v930_v6 = vsel %vm665_vm1, %v866_v3, 0.0  ;;  %v934_v2 = vsel %vm665_vm1, %v868_v15, 0.0  ;;  %v936_v19 = vsel %vm665_vm1, %v869_v59, 0.0  ;;  %v872_v3 = vmul.f32 %v2382_v17, %v2382_v17 }
 0x18b   :  { %v931_v4 = vadd.f32 %v930_v6, %v929_v33  ;;  %v938_v33 = vsel %vm665_vm1, %v870_v57, 0.0  ;;  %v876_v57 = vmul.f32 %v2398_v32, %v2398_v32 }
 0x18d   :  { %v933_v21 = vadd.f32 %v932_v43, %v931_v4  ;;  %v873_v4 = vmul.f32 %v2386_v16, %v2386_v16 }
 0x18f   :  { %v935_v49 = vadd.f32 %v934_v2, %v933_v21  ;;  %v874_v21 = vmul.f32 %v2390_v24, %v2390_v24  ;;  %v942_v2 = vsel %vm665_vm1, %v872_v3, 0.0  ;;  %v944_v59 = vsel %vm665_vm1, %v873_v4, 0.0 }
 0x190   :  { %v878_v3 = vmul.f32 %v2406_v40, %v2406_v40  ;;  %v879_v4 = vmul.f32 %v2410_v39, %v2410_v39 }
 0x191   :  { %v937_v62 = vadd.f32 %v936_v19, %v935_v49  ;;  %v875_v49 = vmul.f32 %v2394_v23, %v2394_v23 }
 0x193   :  { %v939_v6 = vadd.f32 %v938_v33, %v937_v62  ;;  %v946_v62 = vsel %vm665_vm1, %v874_v21, 0.0  ;;  %v880_v21 = vmul.f32 %v2414_v48, %v2414_v48 }
 0x195   :  { %v941_v43 = vadd.f32 %v940_v13, %v939_v6  ;;  %v948_v6 = vsel %vm665_vm1, %v875_v49, 0.0  ;;  %v881_v49 = vmul.f32 %v2418_v47, %v2418_v47 }
 0x197   :  { %v943_v15 = vadd.f32 %v942_v2, %v941_v43  ;;  %v950_v43 = vsel %vm665_vm1, %v876_v57, 0.0  ;;  %v882_v57 = vmul.f32 %v2422_v56, %v2422_v56 }
 0x199   :  { %v945_v19 = vadd.f32 %v944_v59, %v943_v15  ;;  %v952_v15 = vsel %vm665_vm1, %v877_v25, 0.0  ;;  %v883_v25 = vmul.f32 %v2426_v55, %v2426_v55 }
 0x19b   :  { %v947_v33 = vadd.f32 %v946_v62, %v945_v19  ;;  %v954_v19 = vsel %vm665_vm1, %v878_v3, 0.0  ;;  %v884_v3 = vmul.f32 %v2430_v0, %v2430_v0 }
 0x19d   :  { %v949_v13 = vadd.f32 %v948_v6, %v947_v33  ;;  %v956_v33 = vsel %vm665_vm1, %v879_v4, 0.0  ;;  %v885_v4 = vmul.f32 %v2434_v63, %v2434_v63 }
 0x19f   :  { %v951_v2 = vadd.f32 %v950_v43, %v949_v13  ;;  %v958_v13 = vsel %vm665_vm1, %v880_v21, 0.0  ;;  %v886_v21 = vmul.f32 %v2438_v8, %v2438_v8 }
 0x1a1   :  { %v953_v59 = vadd.f32 %v952_v15, %v951_v2  ;;  %v960_v2 = vsel %vm665_vm1, %v881_v49, 0.0  ;;  %v887_v49 = vmul.f32 %v2442_v7, %v2442_v7 }
 0x1a3   :  { %v955_v62 = vadd.f32 %v954_v19, %v953_v59  ;;  %v962_v59 = vsel %vm665_vm1, %v882_v57, 0.0  ;;  %v888_v57 = vmul.f32 %v2446_v27, %v2446_v27 }
 0x1a5   :  { %v957_v6 = vadd.f32 %v956_v33, %v955_v62  ;;  %v964_v62 = vsel %vm665_vm1, %v883_v25, 0.0  ;;  %v4445_v25 = vld [vmem:[#allocation3_spill] sm:$0xff] }
 0x1a7   :  { %v959_v43 = vadd.f32 %v958_v13, %v957_v6  ;;  %v966_v6 = vsel %vm665_vm1, %v884_v3, 0.0  ;;  %v4446_v3 = vld [vmem:[#allocation6_spill] sm:$0xff] }
 0x1a9   :  { %v961_v15 = vadd.f32 %v960_v2, %v959_v43  ;;  %v968_v43 = vsel %vm665_vm1, %v885_v4, 0.0  ;;  %v891_v4 = vmul.f32 %v2458_v37, %v2458_v37 }
 0x1ab   :  { %v963_v19 = vadd.f32 %v962_v59, %v961_v15  ;;  %v970_v15 = vsel %vm665_vm1, %v886_v21, 0.0  ;;  %v892_v21 = vmul.f32 %v2462_v1, %v2462_v1 }
 0x1ad   :  { %v965_v33 = vadd.f32 %v964_v62, %v963_v19  ;;  %v889_v19 = vmul.f32 %v4445_v25, %v4445_v25  ;;  %v972_v62 = vsel %vm665_vm1, %v887_v49, 0.0  ;;  %v893_v49 = vmul.f32 %v2466_v61, %v2466_v61 }
 0x1af   :  { %v967_v13 = vadd.f32 %v966_v6, %v965_v33  ;;  %v890_v33 = vmul.f32 %v4446_v3, %v4446_v3  ;;  %v974_v6 = vsel %vm665_vm1, %v888_v57, 0.0  ;;  %v982_v57 = vsel %vm665_vm1, %v892_v21, 0.0 }
 0x1b0   :  { %v898_v21 = vmul.f32 %v2486_v38, %v2486_v38 }
 0x1b1   :  { %v969_v2 = vadd.f32 %v968_v43, %v967_v13  ;;  %v976_v13 = vsel %vm665_vm1, %v889_v19, 0.0  ;;  %v984_v19 = vsel %vm665_vm1, %v893_v49, 0.0  ;;  %v899_v49 = vmul.f32 %v2490_v45, %v2490_v45 }
 0x1b3   :  { %v971_v59 = vadd.f32 %v970_v15, %v969_v2  ;;  %v978_v2 = vsel %vm665_vm1, %v890_v33, 0.0  ;;  %v896_v33 = vmul.f32 %v2478_v10, %v2478_v10 }
 0x1b5   :  { %v973_v8 = vadd.f32 %v972_v62, %v971_v59  ;;  %v980_v59 = vsel %vm665_vm1, %v891_v4, 0.0  ;;  %v897_v4 = vmul.f32 %v2482_v54, %v2482_v54 }
 0x1b7   :  { %v975_v7 = vadd.f32 %v974_v6, %v973_v8  ;;  %v894_v8 = vmul.f32 %v2470_v5, %v2470_v5 }
 0x1b9   :  { %v977_v43 = vadd.f32 %v976_v13, %v975_v7  ;;  %v895_v7 = vmul.f32 %v2474_v41, %v2474_v41 }
 0x1bb   :  { %v979_v15 = vadd.f32 %v978_v2, %v977_v43  ;;  %v986_v43 = vsel %vm665_vm1, %v894_v8, 0.0  ;;  %v900_v8 = vmul.f32 %v2494_v53, %v2494_v53 }
 0x1bd   :  { %v981_v62 = vadd.f32 %v980_v59, %v979_v15  ;;  %v988_v15 = vsel %vm665_vm1, %v895_v7, 0.0  ;;  %v901_v7 = vmul.f32 %v2498_v29, %v2498_v29 }
 0x1bf   :  { %v983_v6 = vadd.f32 %v982_v57, %v981_v62  ;;  %v990_v62 = vsel %vm665_vm1, %v896_v33, 0.0  ;;  %v902_v33 = vmul.f32 %v2502_v14, %v2502_v14 }
 0x1c1   :  { %v985_v13 = vadd.f32 %v984_v19, %v983_v6  ;;  %v992_v6 = vsel %vm665_vm1, %v897_v4, 0.0  ;;  %v903_v4 = vmul.f32 %v2506_v12, %v2506_v12 }
 0x1c3   :  { %v987_v2 = vadd.f32 %v986_v43, %v985_v13  ;;  %v994_v13 = vsel %vm665_vm1, %v898_v21, 0.0  ;;  %v904_v21 = vmul.f32 %v2510_v20, %v2510_v20 }
 0x1c5   :  { %v989_v59 = vadd.f32 %v988_v15, %v987_v2  ;;  %v996_v2 = vsel %vm665_vm1, %v899_v49, 0.0  ;;  %v905_v49 = vmul.f32 %v2514_v18, %v2514_v18 }
 0x1c7   :  { %v991_v57 = vadd.f32 %v990_v62, %v989_v59  ;;  %v998_v59 = vsel %vm665_vm1, %v900_v8, 0.0  ;;  %v906_v8 = vmul.f32 %v2518_v28, %v2518_v28 }
 0x1c9   :  { %v993_v19 = vadd.f32 %v992_v6, %v991_v57  ;;  %v1000_v57 = vsel %vm665_vm1, %v901_v7, 0.0  ;;  %v907_v7 = vmul.f32 %v2522_v26, %v2522_v26 }
 0x1cb   :  { %v995_v43 = vadd.f32 %v994_v13, %v993_v19  ;;  %v1002_v19 = vsel %vm665_vm1, %v902_v33, 0.0  ;;  %v908_v33 = vmul.f32 %v2526_v36, %v2526_v36 }
 0x1cd   :  { %v997_v15 = vadd.f32 %v996_v2, %v995_v43  ;;  %v1004_v43 = vsel %vm665_vm1, %v903_v4, 0.0  ;;  %v909_v4 = vmul.f32 %v2530_v34, %v2530_v34 }
 0x1cf   :  { %v999_v62 = vadd.f32 %v998_v59, %v997_v15  ;;  %v1006_v15 = vsel %vm665_vm1, %v904_v21, 0.0  ;;  %v910_v21 = vmul.f32 %v2534_v44, %v2534_v44 }
 0x1d1   :  { %v1001_v6 = vadd.f32 %v1000_v57, %v999_v62  ;;  %v1008_v62 = vsel %vm665_vm1, %v905_v49, 0.0  ;;  %v911_v49 = vmul.f32 %v2538_v42, %v2538_v42 }
 0x1d3   :  { %v1003_v13 = vadd.f32 %v1002_v19, %v1001_v6  ;;  %v1010_v6 = vsel %vm665_vm1, %v906_v8, 0.0  ;;  %v912_v8 = vmul.f32 %v2542_v52, %v2542_v52 }
 0x1d5   :  { %v1005_v2 = vadd.f32 %v1004_v43, %v1003_v13  ;;  %v1012_v13 = vsel %vm665_vm1, %v907_v7, 0.0  ;;  %v913_v7 = vmul.f32 %v2546_v50, %v2546_v50 }
 0x1d7   :  { %v1007_v59 = vadd.f32 %v1006_v15, %v1005_v2  ;;  %v1014_v2 = vsel %vm665_vm1, %v908_v33, 0.0  ;;  %v914_v33 = vmul.f32 %v2550_v60, %v2550_v60 }
 0x1d9   :  { %v1009_v57 = vadd.f32 %v1008_v62, %v1007_v59  ;;  %v1016_v59 = vsel %vm665_vm1, %v909_v4, 0.0  ;;  %v915_v4 = vmul.f32 %v2554_v58, %v2554_v58 }
 0x1db   :  { %v1011_v19 = vadd.f32 %v1010_v6, %v1009_v57  ;;  %v1018_v57 = vsel %vm665_vm1, %v910_v21, 0.0  ;;  %v4447_v21 = vld [vmem:[#allocation11_spill] sm:$0xff] }
 0x1dd   :  { %v1013_v43 = vadd.f32 %v1012_v13, %v1011_v19  ;;  %v1020_v19 = vsel %vm665_vm1, %v911_v49, 0.0  ;;  %v4448_v49 = vld [vmem:[#allocation10_spill] sm:$0xff] }
 0x1df   :  { %v1015_v15 = vadd.f32 %v1014_v2, %v1013_v43  ;;  %v1022_v43 = vsel %vm665_vm1, %v912_v8, 0.0  ;;  %v4449_v8 = vld [vmem:[#allocation15_spill] sm:$0xff] }
 0x1e1   :  { %v1017_v62 = vadd.f32 %v1016_v59, %v1015_v15  ;;  %v1024_v15 = vsel %vm665_vm1, %v913_v7, 0.0  ;;  %v4450_v7 = vld [vmem:[#allocation14_spill] sm:$0xff] }
 0x1e3   :  { %v1019_v6 = vadd.f32 %v1018_v57, %v1017_v62  ;;  %v916_v62 = vmul.f32 %v4447_v21, %v4447_v21  ;;  %v1026_v57 = vsel %vm665_vm1, %v914_v33, 0.0  ;;  %v920_v33 = vmul.f32 %v2574_v35, %v2574_v35 }
 0x1e5   :  { %v1021_v13 = vadd.f32 %v1020_v19, %v1019_v6  ;;  %v917_v6 = vmul.f32 %v4448_v49, %v4448_v49  ;;  %v1028_v19 = vsel %vm665_vm1, %v915_v4, 0.0  ;;  %v4456_v49 = vld [vmem:[#allocation19_spill] sm:$0xff] }
 0x1e7   :  { %v1023_v2 = vadd.f32 %v1022_v43, %v1021_v13  ;;  %v918_v13 = vmul.f32 %v4449_v8, %v4449_v8  ;;  %v1030_v43 = vsel %vm665_vm1, %v916_v62, 0.0  ;;  %v1038_v62 = vsel %vm665_vm1, %v920_v33, 0.0  ;;  %v4453_v33 = vld [vmem:[#allocation23_spill] sm:$0xff] }
 0x1e9   :  { %v1025_v59 = vadd.f32 %v1024_v15, %v1023_v2  ;;  %v919_v2 = vmul.f32 %v4450_v7, %v4450_v7  ;;  %v1032_v15 = vsel %vm665_vm1, %v917_v6, 0.0 }
 0x1eb   :  { %v1027_v50 = vadd.f32 %v1026_v57, %v1025_v59  ;;  %v1034_v59 = vsel %vm665_vm1, %v918_v13, 0.0  ;;  %v1036_v4 = vsel %vm665_vm1, %v919_v2, 0.0  ;;  %v4451_v13 = vld [vmem:[#allocation12_spill] sm:$0xff] }
 0x1ec   :  { %v4452_v2 = vld [vmem:[#allocation16_spill] sm:$0xff] }
 0x1ed   :  { %v1029_v60 = vadd.f32 %v1028_v19, %v1027_v50  ;;  %v921_v50 = vmul.f32 %v2578_v30, %v2578_v30 }
 0x1ef   :  { %v1031_v58 = vadd.f32 %v1030_v43, %v1029_v60  ;;  %v922_v60 = vmul.f32 %v2582_v51, %v2582_v51  ;;  %v1040_v6 = vsel %vm665_vm1, %v921_v50, 0.0  ;;  %v4454_v50 = vld [vmem:[#allocation24_spill] sm:$0xff] }
 0x1f1   :  { %v1033_v21 = vadd.f32 %v1032_v15, %v1031_v58  ;;  %v923_v58 = vmul.f32 %v2586_v46, %v2586_v46 }
 0x1f3   :  { %v1035_v57 = vadd.f32 %v1034_v59, %v1033_v21  ;;  %v924_v21 = vmul.f32 %v4451_v13, %v4451_v13  ;;  %v1042_v59 = vsel %vm665_vm1, %v922_v60, 0.0  ;;  %v4455_v60 = vld [vmem:[#allocation25_spill] sm:$0xff] }
 0x1f5   :  { %v1037_v19 = vadd.f32 %v1036_v4, %v1035_v57  ;;  %v925_v57 = vmul.f32 %v4452_v2, %v4452_v2  ;;  %v1044_v4 = vsel %vm665_vm1, %v923_v58, 0.0 }
 0x1f7   :  { %v1039_v43 = vadd.f32 %v1038_v62, %v1037_v19  ;;  %v926_v19 = vmul.f32 %v4453_v33, %v4453_v33  ;;  %v1046_v62 = vsel %vm665_vm1, %v924_v21, 0.0 }
 0x1f9   :  { %v1041_v15 = vadd.f32 %v1040_v6, %v1039_v43  ;;  %v927_v43 = vmul.f32 %v4454_v50, %v4454_v50  ;;  %v1048_v6 = vsel %vm665_vm1, %v925_v57, 0.0 }
 0x1fb   :  { %v1043_v30 = vadd.f32 %v1042_v59, %v1041_v15  ;;  %v928_v15 = vmul.f32 %v4455_v60, %v4455_v60  ;;  %v1050_v59 = vsel %vm665_vm1, %v926_v19, 0.0  ;;  %v4457_v19 = vld [vmem:[#allocation20_spill] sm:$0xff] }
 0x1fd   :  { %v1045_v51 = vadd.f32 %v1044_v4, %v1043_v30  ;;  %v1052_v30 = vsel %vm665_vm1, %v927_v43, 0.0  ;;  %v1054_v4 = vsel %vm665_vm1, %v928_v15, 0.0  ;;  %v4458_v43 = vld [vmem:[#allocation21_spill] sm:$0xff]  ;;  %v4459_v15 = vld [vmem:[#allocation22_spill] sm:$0xff] }
 0x1ff   :  { %v1047_v46 = vadd.f32 %v1046_v62, %v1045_v51 }
 0x201   :  { %v1049_v13 = vadd.f32 %v1048_v6, %v1047_v46 }
 0x203   :  { %v1051_v2 = vadd.f32 %v1050_v59, %v1049_v13 }
 0x205   :  { %v1053_v58 = vadd.f32 %v1052_v30, %v1051_v2 }
 0x207   :  { %v1055_v33 = vadd.f32 %v1054_v4, %v1053_v58  ;;  %v4462_v58 = vld [vmem:[#allocation2_spill] sm:$0xff]  ;;  %v4463_v4 = vld [vmem:[#allocation4_spill] sm:$0xff] }
 0x209   :  { %v1056_v21 = vrot.slane %v1055_v33, 4 }
 0x20b   :  { %v1057_v51 = vadd.f32 %v1056_v21, %v1055_v33 }
 0x20d   :  { %v1058_v62 = vrot.slane %v1057_v51, 2 }
 0x20f   :  { %v1059_v35 = vadd.f32 %v1058_v62, %v1057_v51  ;;  %v4464_v62 = vld [vmem:[#allocation5_spill] sm:$0xff] }
 0x211   :  { %v1060_v7 = vrot.slane %v1059_v35, 1 }
 0x213   :  { %v1061_v8 = vadd.f32 %v1060_v7, %v1059_v35 }
 0x215   :  { %v1062_v57 = vmul.f32 0.001953125, %v1061_v8 }
 0x217   :  { %v1063_v46 = vadd.f32 1e-05, %v1062_v57  ;;  %v4465_v57 = vld [vmem:[#allocation8_spill] sm:$0xff] }
 0x219   :  { %1793 = vrsqrt.f32 %v1063_v46  ;;  %v4466_v46 = vld [vmem:[#allocation7_spill] sm:$0xff] }
 0x223   :  { %v2800_v6 = vpop.eup %1793 }
 0x224   :  { %v2804_v13 = vmul.f32 %v2800_v6, %v4456_v49  ;;  %v2808_v2 = vmul.f32 %v2800_v6, %v4457_v19  ;;  %v2812_v33 = vmul.f32 %v2800_v6, %v4458_v43  ;;  %v2816_v35 = vmul.f32 %v2800_v6, %v4459_v15  ;;  %v4467_v19 = vld [vmem:[#allocation11_spill] sm:$0xff]  ;;  %v4469_v43 = vld [vmem:[#allocation10_spill] sm:$0xff] }
 0x225   :  { %v2820_v8 = vmul.f32 %v2800_v6, %v2370_v22  ;;  %v2824_v49 = vmul.f32 %v2800_v6, %v4454_v50  ;;  %v2828_v7 = vmul.f32 %v2800_v6, %v4455_v60  ;;  %v2832_v59 = vmul.f32 %v2800_v6, %v2374_v11  ;;  %v3025_v15 = vld [vmem:[%s4320_s2] ss:$0 sm:$0xff] }
 0x226   :  { %v2836_v30 = vmul.f32 %v2800_v6, %v2378_v9  ;;  %v2840_v22 = vmul.f32 %v2800_v6, %v2382_v17  ;;  %v2844_v50 = vmul.f32 %v2800_v6, %v2386_v16  ;;  %v2848_v60 = vmul.f32 %v2800_v6, %v2390_v24 }
 0x227   :  { %4460 = vst [vmem:[#allocation3_spill] sm:$0xff] %v2824_v49  ;;  %4461 = vst [vmem:[#allocation6_spill] sm:$0xff] %v2828_v7  ;;  %v2852_v11 = vmul.f32 %v2800_v6, %v2394_v23  ;;  %v2856_v9 = vmul.f32 %v2800_v6, %v2398_v32  ;;  %v2860_v17 = vmul.f32 %v2800_v6, %v2402_v31  ;;  %v4477_v7 = vld [vmem:[#allocation17_spill] sm:$0xff] }
 0x228   :  { %v2864_v16 = vmul.f32 %v2800_v6, %v2406_v40  ;;  %v2868_v24 = vmul.f32 %v2800_v6, %v2410_v39  ;;  %v2872_v23 = vmul.f32 %v2800_v6, %v2414_v48  ;;  %v2876_v32 = vmul.f32 %v2800_v6, %v2418_v47  ;;  %v4478_v49 = vld [vmem:[#allocation9_spill] sm:$0xff] }
 0x229   :  { %v2880_v31 = vmul.f32 %v2800_v6, %v2422_v56  ;;  %v2884_v40 = vmul.f32 %v2800_v6, %v2426_v55  ;;  %v2888_v39 = vmul.f32 %v2800_v6, %v2430_v0  ;;  %v2892_v48 = vmul.f32 %v2800_v6, %v2434_v63 }
 0x22a   :  { %v2896_v47 = vmul.f32 %v2800_v6, %v4462_v58  ;;  %v2900_v56 = vmul.f32 %v2800_v6, %v4463_v4  ;;  %v2904_v55 = vmul.f32 %v2800_v6, %v2446_v27  ;;  %v2908_v0 = vmul.f32 %v2800_v6, %v4445_v25  ;;  %v4471_v58 = vld [vmem:[#allocation15_spill] sm:$0xff] }
 0x22b   :  { %v2912_v63 = vmul.f32 %v2800_v6, %v4446_v3  ;;  %v2916_v21 = vmul.f32 %v2800_v6, %v2458_v37  ;;  %v2920_v51 = vmul.f32 %v2800_v6, %v2462_v1  ;;  %v2924_v27 = vmul.f32 %v2800_v6, %v2466_v61 }
 0x22c   :  { %v2928_v25 = vmul.f32 %v2800_v6, %v2470_v5  ;;  %v2932_v3 = vmul.f32 %v2800_v6, %v2474_v41  ;;  %v2936_v37 = vmul.f32 %v2800_v6, %v2478_v10  ;;  %v2940_v1 = vmul.f32 %v2800_v6, %v2482_v54 }
 0x22d   :  { %v2944_v61 = vmul.f32 %v2800_v6, %v2486_v38  ;;  %v2948_v5 = vmul.f32 %v2800_v6, %v2490_v45  ;;  %v2952_v41 = vmul.f32 %v2800_v6, %v2494_v53  ;;  %v2956_v10 = vmul.f32 %v2800_v6, %v2498_v29 }
 0x22e   :  { %v2960_v54 = vmul.f32 %v2800_v6, %v2502_v14  ;;  %v2964_v38 = vmul.f32 %v2800_v6, %v2506_v12  ;;  %v2968_v45 = vmul.f32 %v2800_v6, %v2510_v20  ;;  %v2972_v53 = vmul.f32 %v2800_v6, %v2514_v18 }
 0x22f   :  { %v2976_v29 = vmul.f32 %v2800_v6, %v2518_v28  ;;  %v2980_v14 = vmul.f32 %v2800_v6, %v2522_v26  ;;  %v2984_v12 = vmul.f32 %v2800_v6, %v2526_v36  ;;  %v2988_v20 = vmul.f32 %v2800_v6, %v2530_v34 }
 0x230   :  { %v2992_v18 = vmul.f32 %v2800_v6, %v2534_v44  ;;  %v2996_v28 = vmul.f32 %v2800_v6, %v2538_v42  ;;  %v3000_v26 = vmul.f32 %v2800_v6, %v2542_v52  ;;  %v3004_v36 = vmul.f32 %v2800_v6, %v4464_v62  ;;  %v4473_v62 = vld [vmem:[#allocation14_spill] sm:$0xff] }
 0x231   :  { %v3008_v34 = vmul.f32 %v2800_v6, %v4465_v57  ;;  %v3012_v44 = vmul.f32 %v2800_v6, %v4466_v46  ;;  %v3016_v42 = vmul.f32 %v2800_v6, %v4467_v19  ;;  %v3020_v52 = vmul.f32 %v2800_v6, %v4469_v43  ;;  %v4475_v46 = vld [vmem:[#allocation18_spill] sm:$0xff] }
 0x232   :  { %v3029_v4 = vmul.f32 %v2800_v6, %v4471_v58  ;;  %v3033_v57 = vmul.f32 %v2800_v6, %v4473_v62  ;;  %v3037_v19 = vmul.f32 %v2800_v6, %v4475_v46  ;;  %v3041_v43 = vmul.f32 %v2800_v6, %v4477_v7 }
 0x233   :  { %4468 = vst [vmem:[#allocation24_spill] sm:$0xff] %v3016_v42  ;;  %4470 = vst [vmem:[#allocation25_spill] sm:$0xff] %v3020_v52  ;;  %v3045_v52 = vmul.f32 %v2800_v6, %v4478_v49  ;;  %v4479_v42 = vld [vmem:[#allocation13_spill] sm:$0xff]  ;;  %v3065_v49 = vmul.f32 %v3025_v15, %v2804_v13  ;;  %v3085_v13 = vmul.f32 %v3025_v15, %v2832_v59 }
 0x234   :  { %4472 = vst [vmem:[#allocation19_spill] sm:$0xff] %v3029_v4  ;;  %4474 = vst [vmem:[#allocation20_spill] sm:$0xff] %v3033_v57  ;;  %v3049_v58 = vmul.f32 %v2800_v6, %v4479_v42  ;;  %v4480_v4 = vld [vmem:[#allocation12_spill] sm:$0xff]  ;;  %v3069_v42 = vmul.f32 %v3025_v15, %v2808_v2  ;;  %v3089_v2 = vmul.f32 %v3025_v15, %v2836_v30 }
 0x235   :  { %4476 = vst [vmem:[#allocation21_spill] sm:$0xff] %v3037_v19  ;;  %v3053_v62 = vmul.f32 %v2800_v6, %v4480_v4  ;;  %v4481_v57 = vld [vmem:[#allocation16_spill] sm:$0xff]  ;;  %v4482_v19 = vld [vmem:[#allocation23_spill] sm:$0xff]  ;;  %v3073_v4 = vmul.f32 %v3025_v15, %v2812_v33  ;;  %v3093_v33 = vmul.f32 %v3025_v15, %v2840_v22  ;;  %v3105_v59 = vmul.f32 %v3025_v15, %v2852_v11 }
 0x236   :  { %v3057_v46 = vmul.f32 %v2800_v6, %v4481_v57  ;;  %v3061_v7 = vmul.f32 %v2800_v6, %v4482_v19  ;;  %v3077_v57 = vmul.f32 %v3025_v15, %v2816_v35  ;;  %v3081_v6 = vmul.f32 %v3025_v15, %v2820_v8 }
 0x237   :  { %v3097_v35 = vmul.f32 %v3025_v15, %v2844_v50  ;;  %v3101_v8 = vmul.f32 %v3025_v15, %v2848_v60  ;;  %v3109_v30 = vmul.f32 %v3025_v15, %v2856_v9  ;;  %v3113_v22 = vmul.f32 %v3025_v15, %v2860_v17 }
 0x238   :  { %v3117_v50 = vmul.f32 %v3025_v15, %v2864_v16  ;;  %v3121_v60 = vmul.f32 %v3025_v15, %v2868_v24  ;;  %v3125_v11 = vmul.f32 %v3025_v15, %v2872_v23  ;;  %v3129_v9 = vmul.f32 %v3025_v15, %v2876_v32 }
 0x239   :  { %v3133_v17 = vmul.f32 %v3025_v15, %v2880_v31  ;;  %v3137_v16 = vmul.f32 %v3025_v15, %v2884_v40  ;;  %v3141_v24 = vmul.f32 %v3025_v15, %v2888_v39  ;;  %v3145_v23 = vmul.f32 %v3025_v15, %v2892_v48 }
 0x23a   :  { %v3149_v32 = vmul.f32 %v3025_v15, %v2896_v47  ;;  %v3153_v31 = vmul.f32 %v3025_v15, %v2900_v56  ;;  %v3157_v40 = vmul.f32 %v3025_v15, %v2904_v55  ;;  %v3161_v39 = vmul.f32 %v3025_v15, %v2908_v0  ;;  %v4487_v19 = vld [vmem:[#allocation24_spill] sm:$0xff] }
 0x23b   :  { %v3165_v48 = vmul.f32 %v3025_v15, %v2912_v63  ;;  %v3169_v47 = vmul.f32 %v3025_v15, %v2916_v21  ;;  %v3173_v56 = vmul.f32 %v3025_v15, %v2920_v51  ;;  %v3177_v55 = vmul.f32 %v3025_v15, %v2924_v27 }
 0x23c   :  { %v3181_v0 = vmul.f32 %v3025_v15, %v2928_v25  ;;  %v3185_v63 = vmul.f32 %v3025_v15, %v2932_v3  ;;  %v3189_v21 = vmul.f32 %v3025_v15, %v2936_v37  ;;  %v3193_v51 = vmul.f32 %v3025_v15, %v2940_v1 }
 0x23d   :  { %v3197_v27 = vmul.f32 %v3025_v15, %v2944_v61  ;;  %v3201_v25 = vmul.f32 %v3025_v15, %v2948_v5  ;;  %v3205_v3 = vmul.f32 %v3025_v15, %v2952_v41  ;;  %v3209_v37 = vmul.f32 %v3025_v15, %v2956_v10 }
 0x23e   :  { %v3213_v1 = vmul.f32 %v3025_v15, %v2960_v54  ;;  %v3217_v61 = vmul.f32 %v3025_v15, %v2964_v38  ;;  %v3221_v5 = vmul.f32 %v3025_v15, %v2968_v45  ;;  %v3225_v41 = vmul.f32 %v3025_v15, %v2972_v53 }
 0x23f   :  { %v3229_v10 = vmul.f32 %v3025_v15, %v2976_v29  ;;  %v3233_v54 = vmul.f32 %v3025_v15, %v2980_v14  ;;  %v3237_v38 = vmul.f32 %v3025_v15, %v2984_v12  ;;  %v3241_v45 = vmul.f32 %v3025_v15, %v2988_v20 }
 0x240   :  { %v3245_v53 = vmul.f32 %v3025_v15, %v2992_v18  ;;  %v3249_v29 = vmul.f32 %v3025_v15, %v2996_v28  ;;  %v3253_v14 = vmul.f32 %v3025_v15, %v3000_v26  ;;  %v3257_v12 = vmul.f32 %v3025_v15, %v3004_v36 }
 0x241   :  { %v3261_v20 = vmul.f32 %v3025_v15, %v3008_v34  ;;  %v3265_v18 = vmul.f32 %v3025_v15, %v3012_v44  ;;  %v3269_v28 = vmul.f32 %v3025_v15, %v4487_v19  ;;  %v3286_v44 = vld [vmem:[%s4321_s3] ss:$0 sm:$0xff] }
 0x242   :  { %4483 = vst [vmem:[#allocation22_spill] sm:$0xff] %v3249_v29  ;;  %4484 = vst [vmem:[#allocation2_spill] sm:$0xff] %v3253_v14  ;;  %v4488_v29 = vld [vmem:[#allocation25_spill] sm:$0xff]  ;;  %v4489_v14 = vld [vmem:[#allocation19_spill] sm:$0xff] }
 0x243   :  { %4485 = vst [vmem:[#allocation4_spill] sm:$0xff] %v3257_v12  ;;  %4486 = vst [vmem:[#allocation5_spill] sm:$0xff] %v3265_v18  ;;  %v3273_v26 = vmul.f32 %v3025_v15, %v4488_v29  ;;  %v3277_v36 = vmul.f32 %v3025_v15, %v4489_v14  ;;  %v4490_v12 = vld [vmem:[#allocation20_spill] sm:$0xff]  ;;  %v4492_v18 = vld [vmem:[#allocation21_spill] sm:$0xff]  ;;  %v3294_v29 = vmul.f32 %v3025_v15, %v3041_v43 }
 0x244   :  { %v3281_v34 = vmul.f32 %v3025_v15, %v4490_v12  ;;  %v3290_v19 = vmul.f32 %v3025_v15, %v4492_v18  ;;  %v3298_v14 = vmul.f32 %v3025_v15, %v3045_v52  ;;  %v3302_v12 = vmul.f32 %v3025_v15, %v3049_v58 }
 0x245   :  { %4493 = vst [vmem:[#allocation7_spill] sm:$0xff] %v3294_v29  ;;  %v3310_v18 = vmul.f32 %v3025_v15, %v3057_v46  ;;  %v3314_v43 = vmul.f32 %v3025_v15, %v3061_v7  ;;  %v4495_v29 = vld [vmem:[#allocation3_spill] sm:$0xff]  ;;  %v3330_v46 = vadd.f32 %v3286_v44, %v3069_v42  ;;  %v3334_v7 = vadd.f32 %v3286_v44, %v3073_v4 }
 0x246   :  { %4491 = vst [vmem:[#allocation8_spill] sm:$0xff] %v3281_v34  ;;  %4494 = vst [vmem:[#allocation11_spill] sm:$0xff] %v3298_v14  ;;  %v3306_v34 = vmul.f32 %v3025_v15, %v3053_v62  ;;  %v3318_v52 = vmul.f32 %v3025_v15, %v4495_v29  ;;  %v4496_v14 = vld [vmem:[#allocation6_spill] sm:$0xff]  ;;  %v3326_v62 = vadd.f32 %v3286_v44, %v3065_v49 }
 0x247   :  { %v3322_v58 = vmul.f32 %v3025_v15, %v4496_v14  ;;  %v3338_v29 = vadd.f32 %v3286_v44, %v3077_v57  ;;  %v3342_v15 = vadd.f32 %v3286_v44, %v3081_v6  ;;  %v3346_v49 = vadd.f32 %v3286_v44, %v3085_v13 }
 0x248   :  { %v3350_v42 = vadd.f32 %v3286_v44, %v3089_v2  ;;  %v3354_v4 = vadd.f32 %v3286_v44, %v3093_v33  ;;  %v3358_v57 = vadd.f32 %v3286_v44, %v3097_v35  ;;  %v3362_v6 = vadd.f32 %v3286_v44, %v3101_v8 }
 0x249   :  { %v3366_v13 = vadd.f32 %v3286_v44, %v3105_v59  ;;  %v3370_v2 = vadd.f32 %v3286_v44, %v3109_v30  ;;  %v3374_v33 = vadd.f32 %v3286_v44, %v3113_v22  ;;  %v3378_v35 = vadd.f32 %v3286_v44, %v3117_v50  ;;  %v4500_v14 = vld [vmem:[#allocation22_spill] sm:$0xff] }
 0x24a   :  { %v3382_v8 = vadd.f32 %v3286_v44, %v3121_v60  ;;  %v3386_v59 = vadd.f32 %v3286_v44, %v3125_v11  ;;  %v3390_v30 = vadd.f32 %v3286_v44, %v3129_v9  ;;  %v3394_v22 = vadd.f32 %v3286_v44, %v3133_v17 }
 0x24b   :  { %v3398_v50 = vadd.f32 %v3286_v44, %v3137_v16  ;;  %v3402_v60 = vadd.f32 %v3286_v44, %v3141_v24  ;;  %v3406_v11 = vadd.f32 %v3286_v44, %v3145_v23  ;;  %v3410_v9 = vadd.f32 %v3286_v44, %v3149_v32 }
 0x24c   :  { %v3414_v17 = vadd.f32 %v3286_v44, %v3153_v31  ;;  %v3418_v16 = vadd.f32 %v3286_v44, %v3157_v40  ;;  %v3422_v24 = vadd.f32 %v3286_v44, %v3161_v39  ;;  %v3426_v23 = vadd.f32 %v3286_v44, %v3165_v48 }
 0x24d   :  { %v3430_v32 = vadd.f32 %v3286_v44, %v3169_v47  ;;  %v3434_v31 = vadd.f32 %v3286_v44, %v3173_v56  ;;  %v3438_v40 = vadd.f32 %v3286_v44, %v3177_v55  ;;  %v3442_v39 = vadd.f32 %v3286_v44, %v3181_v0 }
 0x24e   :  { %v3446_v48 = vadd.f32 %v3286_v44, %v3185_v63  ;;  %v3450_v47 = vadd.f32 %v3286_v44, %v3189_v21  ;;  %v3454_v56 = vadd.f32 %v3286_v44, %v3193_v51  ;;  %v3458_v55 = vadd.f32 %v3286_v44, %v3197_v27 }
 0x24f   :  { %v3462_v0 = vadd.f32 %v3286_v44, %v3201_v25  ;;  %v3466_v63 = vadd.f32 %v3286_v44, %v3205_v3  ;;  %v3470_v21 = vadd.f32 %v3286_v44, %v3209_v37  ;;  %v3474_v51 = vadd.f32 %v3286_v44, %v3213_v1 }
 0x250   :  { %v3478_v27 = vadd.f32 %v3286_v44, %v3217_v61  ;;  %v3482_v25 = vadd.f32 %v3286_v44, %v3221_v5  ;;  %v3486_v3 = vadd.f32 %v3286_v44, %v3225_v41  ;;  %v3490_v37 = vadd.f32 %v3286_v44, %v3229_v10 }
 0x251   :  { %v3494_v1 = vadd.f32 %v3286_v44, %v3233_v54  ;;  %v3498_v61 = vadd.f32 %v3286_v44, %v3237_v38  ;;  %v3502_v5 = vadd.f32 %v3286_v44, %v3241_v45  ;;  %v3506_v41 = vadd.f32 %v3286_v44, %v3245_v53 }
 0x252   :  { %4497 = vst [vmem:[#allocation10_spill] sm:$0xff] %v3490_v37  ;;  %v3510_v10 = vadd.f32 %v3286_v44, %v4500_v14  ;;  %v4501_v37 = vld [vmem:[#allocation2_spill] sm:$0xff]  ;;  %v3522_v45 = vadd.f32 %v3286_v44, %v3261_v20  ;;  %v3530_v14 = vadd.f32 %v3286_v44, %v3269_v28  ;;  %vm1271_vm2 = vcmp.gt.f32.partialorder %v3326_v62, 0.0 }
 0x253   :  { %4498 = vst [vmem:[#allocation15_spill] sm:$0xff] %v3494_v1  ;;  %4499 = vst [vmem:[#allocation14_spill] sm:$0xff] %v3502_v5  ;;  %v3514_v54 = vadd.f32 %v3286_v44, %v4501_v37  ;;  %v4502_v1 = vld [vmem:[#allocation4_spill] sm:$0xff]  ;;  %v4505_v5 = vld [vmem:[#allocation5_spill] sm:$0xff]  ;;  %v3534_v37 = vadd.f32 %v3286_v44, %v3273_v26  ;;  %vm1272_vm3 = vcmp.gt.f32.partialorder %v3330_v46, 0.0  ;;  %vm1273_vm4 = vcmp.gt.f32.partialorder %v3334_v7, 0.0 }
 0x254   :  { %v3518_v38 = vadd.f32 %v3286_v44, %v4502_v1  ;;  %4504 = vst [vmem:[#allocation17_spill] sm:$0xff] %v3522_v45  ;;  %v3526_v53 = vadd.f32 %v3286_v44, %v4505_v5  ;;  %4507 = vst [vmem:[#allocation13_spill] sm:$0xff] %v3530_v14  ;;  %v3538_v1 = vadd.f32 %v3286_v44, %v3277_v36  ;;  %v4514_v14 = vld [vmem:[#allocation11_spill] sm:$0xff]  ;;  %vm1274_vm5 = vcmp.gt.f32.partialorder %v3338_v29, 0.0 }
 0x255   :  { %v3546_v5 = vadd.f32 %v3286_v44, %v3290_v19  ;;  %v3554_v26 = vadd.f32 %v3286_v44, %v4514_v14  ;;  %v3558_v36 = vadd.f32 %v3286_v44, %v3302_v12  ;;  %v3566_v19 = vadd.f32 %v3286_v44, %v3310_v18 }
 0x256   :  { %4503 = vst [vmem:[#allocation18_spill] sm:$0xff] %v3518_v38  ;;  %4506 = vst [vmem:[#allocation9_spill] sm:$0xff] %v3526_v53  ;;  %v4509_v38 = vld [vmem:[#allocation8_spill] sm:$0xff]  ;;  %v4512_v53 = vld [vmem:[#allocation7_spill] sm:$0xff]  ;;  %vm1275_vm6 = vcmp.gt.f32.partialorder %v3342_v15, 0.0  ;;  %vm1276_vm7 = vcmp.gt.f32.partialorder %v3346_v49, 0.0  ;;  %v3591_v14 = vadd.f32 %v3286_v44, %v3322_v58 }
 0x257   :  { %4508 = vst [vmem:[#allocation12_spill] sm:$0xff] %v3538_v1  ;;  %v3542_v20 = vadd.f32 %v3286_v44, %v4509_v38  ;;  %4511 = vst [vmem:[#allocation23_spill] sm:$0xff] %v3546_v5  ;;  %v3550_v28 = vadd.f32 %v3286_v44, %v4512_v53  ;;  %v3562_v38 = vadd.f32 %v3286_v44, %v3306_v34  ;;  %vm1277_vm8 = vcmp.gt.f32.partialorder %v3350_v42, 0.0 }
 0x258   :  { %4515 = vst [vmem:[#allocation25_spill] sm:$0xff] %v3554_v26  ;;  %4516 = vst [vmem:[#allocation19_spill] sm:$0xff] %v3558_v36  ;;  %v3570_v53 = vadd.f32 %v3286_v44, %v3314_v43  ;;  %vm1278_vm9 = vcmp.gt.f32.partialorder %v3354_v4, 0.0  ;;  %vm1279_vm10 = vcmp.gt.f32.partialorder %v3358_v57, 0.0  ;;  %v3583_v34 = vadd.f32 %v3286_v44, %v3318_v52 }
 0x259   :  { %4510 = vst [vmem:[#allocation16_spill] sm:$0xff] %v3542_v20  ;;  %4513 = vst [vmem:[#allocation24_spill] sm:$0xff] %v3550_v28  ;;  %vm1280_vm11 = vcmp.gt.f32.partialorder %v3362_v6, 0.0  ;;  %v1335_v12 = vmul.f32 0.01, %v3326_v62  ;;  %vm1281_vm12 = vcmp.gt.f32.partialorder %v3366_v13, 0.0 }
 0x25a   :  { %4517 = vst [vmem:[#allocation20_spill] sm:$0xff] %v3562_v38  ;;  %4518 = vst [vmem:[#allocation21_spill] sm:$0xff] %v3566_v19  ;;  %v1336_v18 = vmul.f32 0.01, %v3330_v46  ;;  %v1337_v43 = vmul.f32 0.01, %v3334_v7 }
 0x25b   :  { %4519 = vst [vmem:[#allocation3_spill] sm:$0xff] %v3570_v53  ;;  %4520 = vst [vmem:[#allocation6_spill] sm:$0xff] %v3583_v34  ;;  %v1338_v53 = vmul.f32 0.01, %v3338_v29  ;;  %v1339_v19 = vmul.f32 0.01, %v3342_v15  ;;  %v1399_v44 = vsel %vm1271_vm2, %v3326_v62, %v1335_v12 }
 0x25c   :  { %4521 = vst [vmem:[#allocation22_spill] sm:$0xff] %v3591_v14  ;;  %v1340_v52 = vmul.f32 0.01, %v3346_v49  ;;  %vm1282_vm13 = vcmp.gt.f32.partialorder %v3370_v2, 0.0  ;;  %v1341_v34 = vmul.f32 0.01, %v3350_v42  ;;  %v1400_v28 = vsel %vm1272_vm3, %v3330_v46, %v1336_v18 }
 0x25d   :  { %v1342_v38 = vmul.f32 0.01, %v3354_v4  ;;  %v1343_v36 = vmul.f32 0.01, %v3358_v57  ;;  %vm1283_vm14 = vcmp.gt.f32.partialorder %v3374_v33, 0.0  ;;  %1463 = vst.msk [vmem:[%s4322_s4] sm:$0xff] %vm665_vm1, %v1399_v44  ;;  %v1401_v46 = vsel %vm1273_vm4, %v3334_v7, %v1337_v43 }
 0x25e   :  { %v1344_v58 = vmul.f32 0.01, %v3362_v6  ;;  %v3607_v14 = vmul.f32 0.01, %v3366_v13  ;;  %v3610_v26 = vmul.f32 0.01, %v3370_v2  ;;  %v1402_v7 = vsel %vm1274_vm5, %v3338_v29, %v1338_v53 }
 0x25f   :  { %vm1284_vm15 = vcmp.gt.f32.partialorder %v3378_v35, 0.0  ;;  %v3621_v62 = vmul.f32 0.01, %v3374_v33  ;;  %v3624_v12 = vmul.f32 0.01, %v3378_v35  ;;  %1464 = vst.msk [vmem:[%s4322_s4 + $0x8] sm:$0xff] %vm665_vm1, %v1400_v28  ;;  %v1403_v29 = vsel %vm1275_vm6, %v3342_v15, %v1339_v19 }
 0x260   :  { %v3627_v5 = vmul.f32 0.01, %v3382_v8  ;;  %vm1285_vm0 = vcmp.gt.f32.partialorder %v3382_v8, 0.0  ;;  %v3638_v18 = vmul.f32 0.01, %v3386_v59  ;;  %1465 = vst.msk [vmem:[%s4322_s4 + $0x10] sm:$0xff] %vm665_vm1, %v1401_v46  ;;  %v1404_v15 = vsel %vm1276_vm7, %v3346_v49, %v1340_v52 }
 0x261   :  { %v3641_v44 = vmul.f32 0.01, %v3390_v30  ;;  %v3644_v20 = vmul.f32 0.01, %v3394_v22  ;;  %vm1286_vm2 = vcmp.gt.f32.partialorder %v3386_v59, 0.0  ;;  %1466 = vst.msk [vmem:[%s4322_s4 + $0x18] sm:$0xff] %vm665_vm1, %v1402_v7  ;;  %v1405_v49 = vsel %vm1277_vm8, %v3350_v42, %v1341_v34 }
 0x262   :  { %v3655_v28 = vmul.f32 0.01, %v3398_v50  ;;  %v3658_v43 = vmul.f32 0.01, %v3402_v60  ;;  %vm1287_vm3 = vcmp.gt.f32.partialorder %v3390_v30, 0.0  ;;  %1467 = vst.msk [vmem:[%s4322_s4 + $0x20] sm:$0xff] %vm665_vm1, %v1403_v29  ;;  %v1406_v42 = vsel %vm1278_vm9, %v3354_v4, %v1342_v38 }
 0x263   :  { %4522 = vst [vmem:[#allocation2_spill] sm:$0xff] %v3641_v44  ;;  %v3661_v44 = vmul.f32 0.01, %v3406_v11  ;;  %v3672_v53 = vmul.f32 0.01, %v3410_v9  ;;  %vm1288_vm4 = vcmp.gt.f32.partialorder %v3394_v22, 0.0  ;;  %v1407_v4 = vsel %vm1279_vm10, %v3358_v57, %v1343_v36 }
 0x264   :  { %4523 = vst [vmem:[#allocation4_spill] sm:$0xff] %v3658_v43  ;;  %v3675_v46 = vmul.f32 0.01, %v3414_v17  ;;  %v3678_v43 = vmul.f32 0.01, %v3418_v16  ;;  %1468 = vst.msk [vmem:[%s4322_s4 + $0x28] sm:$0xff] %vm665_vm1, %v1404_v15  ;;  %v1408_v36 = vsel %vm1280_vm11, %v3362_v6, %v1344_v58  ;;  %v1409_v58 = vsel %vm1281_vm12, %v3366_v13, %v3607_v14 }
 0x265   :  { %v3689_v19 = vmul.f32 0.01, %v3422_v24  ;;  %v3692_v7 = vmul.f32 0.01, %v3426_v23  ;;  %vm1289_vm5 = vcmp.gt.f32.partialorder %v3398_v50, 0.0  ;;  %1469 = vst.msk [vmem:[%s4322_s4 + $0x30] sm:$0xff] %vm665_vm1, %v1405_v49 }
 0x266   :  { %4524 = vst [vmem:[#allocation5_spill] sm:$0xff] %v3675_v46  ;;  %v3695_v46 = vmul.f32 0.01, %v3430_v32  ;;  %v3706_v52 = vmul.f32 0.01, %v3434_v31  ;;  %1470 = vst.msk [vmem:[%s4322_s4 + $0x38] sm:$0xff] %vm665_vm1, %v1406_v42 }
 0x267   :  { %4525 = vst [vmem:[#allocation8_spill] sm:$0xff] %v3692_v7  ;;  %v3709_v29 = vmul.f32 0.01, %v3438_v40  ;;  %v3712_v7 = vmul.f32 0.01, %v3442_v39  ;;  %vm1293_vm9 = vcmp.gt.f32.partialorder %v3414_v17, 0.0 }
 0x268   :  { %v3725_v34 = vmul.f32 0.01, %v3446_v48  ;;  %v3728_v15 = vmul.f32 0.01, %v3450_v47  ;;  %v3745_v38 = vmul.f32 0.01, %v3458_v55 }
 0x269   :  { %4526 = vst [vmem:[#allocation7_spill] sm:$0xff] %v3712_v7  ;;  %v3731_v7 = vmul.f32 0.01, %v3454_v56  ;;  %v3748_v49 = vmul.f32 0.01, %v3462_v0  ;;  %1471 = vst.msk [vmem:[%s4322_s4 + $0x40] sm:$0xff] %vm665_vm1, %v1407_v4 }
 0x26a   :  { %v3751_v57 = vmul.f32 0.01, %v3466_v63  ;;  %vm1297_vm10 = vcmp.gt.f32.partialorder %v3430_v32, 0.0  ;;  %v3765_v42 = vmul.f32 0.01, %v3470_v21  ;;  %1472 = vst.msk [vmem:[%s4322_s4 + $0x48] sm:$0xff] %vm665_vm1, %v1408_v36  ;;  %v1410_v36 = vsel %vm1282_vm13, %v3370_v2, %v3610_v26 }
 0x26b   :  { %v3771_v6 = vmul.f32 0.01, %v3478_v27  ;;  %vm1301_vm11 = vcmp.gt.f32.partialorder %v3446_v48, 0.0  ;;  %v3786_v4 = vmul.f32 0.01, %v3482_v25  ;;  %v4531_v13 = vld [vmem:[#allocation10_spill] sm:$0xff] }
 0x26c   :  { %4527 = vst [vmem:[#allocation11_spill] sm:$0xff] %v3751_v57  ;;  %v3768_v57 = vmul.f32 0.01, %v3474_v51  ;;  %v3792_v14 = vmul.f32 0.01, %v4531_v13  ;;  %1473 = vst.msk [vmem:[%s4322_s4 + $0x50] sm:$0xff] %vm665_vm1, %v1409_v58  ;;  %v1411_v58 = vsel %vm1283_vm14, %v3374_v33, %v3621_v62  ;;  %v1412_v62 = vsel %vm1284_vm15, %v3378_v35, %v3624_v12 }
 0x26d   :  { %4528 = vst [vmem:[#allocation26_spill] sm:$0xff] %v3771_v6  ;;  %4529 = vst [vmem:[#allocation27_spill] sm:$0xff] %v3786_v4  ;;  %v3789_v6 = vmul.f32 0.01, %v3486_v3  ;;  %vm1305_vm12 = vcmp.gt.f32.partialorder %v3462_v0, 0.0  ;;  %v4535_v2 = vld [vmem:[#allocation14_spill] sm:$0xff] }
 0x26e   :  { %4532 = vst [vmem:[#allocation10_spill] sm:$0xff] %v3792_v14  ;;  %v3810_v4 = vmul.f32 0.01, %v3498_v61  ;;  %v3813_v26 = vmul.f32 0.01, %v4535_v2  ;;  %1474 = vst.msk [vmem:[%s4322_s4 + $0x58] sm:$0xff] %vm665_vm1, %v1410_v36 }
 0x26f   :  { %4530 = vst [vmem:[#allocation28_spill] sm:$0xff] %v3789_v6  ;;  %v4533_v6 = vld [vmem:[#allocation15_spill] sm:$0xff]  ;;  %vm1309_vm13 = vcmp.gt.f32.partialorder %v3478_v27, 0.0  ;;  %v3834_v33 = vmul.f32 0.01, %v3514_v54  ;;  %1475 = vst.msk [vmem:[%s4322_s4 + $0x60] sm:$0xff] %vm665_vm1, %v1411_v58  ;;  %v1413_v58 = vsel %vm1285_vm0, %v3382_v8, %v3627_v5  ;;  %v1414_v5 = vsel %vm1286_vm2, %v3386_v59, %v3638_v18 }
 0x270   :  { %v3807_v14 = vmul.f32 0.01, %v4533_v6  ;;  %4534 = vst [vmem:[#allocation15_spill] sm:$0xff] %v3810_v4  ;;  %4536 = vst [vmem:[#allocation14_spill] sm:$0xff] %v3813_v26  ;;  %v3828_v26 = vmul.f32 0.01, %v3506_v41 }
 0x271   :  { %v3831_v4 = vmul.f32 0.01, %v3510_v10  ;;  %4538 = vst [vmem:[#allocation30_spill] sm:$0xff] %v3834_v33  ;;  %vm1313_vm14 = vcmp.gt.f32.partialorder %v4533_v6, 0.0  ;;  %v4539_v36 = vld [vmem:[#allocation18_spill] sm:$0xff]  ;;  %v4542_v35 = vld [vmem:[#allocation9_spill] sm:$0xff] }
 0x272   :  { %v3849_v33 = vmul.f32 0.01, %v4539_v36  ;;  %v3855_v12 = vmul.f32 0.01, %v4542_v35  ;;  %1476 = vst.msk [vmem:[%s4322_s4 + $0x68] sm:$0xff] %vm665_vm1, %v1412_v62  ;;  %vm1317_vm15 = vcmp.gt.f32.partialorder %v3510_v10, 0.0 }
 0x273   :  { %4537 = vst [vmem:[#allocation29_spill] sm:$0xff] %v3831_v4  ;;  %v3852_v4 = vmul.f32 0.01, %v3522_v45  ;;  %v3876_v8 = vmul.f32 0.01, %v3538_v1  ;;  %1477 = vst.msk [vmem:[%s4322_s4 + $0x70] sm:$0xff] %vm665_vm1, %v1413_v58 }
 0x274   :  { %4540 = vst [vmem:[#allocation18_spill] sm:$0xff] %v3849_v33  ;;  %4543 = vst [vmem:[#allocation9_spill] sm:$0xff] %v3855_v12  ;;  %v3873_v33 = vmul.f32 0.01, %v3534_v37  ;;  %vm1321_vm0 = vcmp.gt.f32.partialorder %v4542_v35, 0.0  ;;  %v4548_v62 = vld [vmem:[#allocation16_spill] sm:$0xff] }
 0x275   :  { %4541 = vst [vmem:[#allocation31_spill] sm:$0xff] %v3852_v4  ;;  %v4544_v4 = vld [vmem:[#allocation13_spill] sm:$0xff]  ;;  %4547 = vst [vmem:[#allocation33_spill] sm:$0xff] %v3876_v8  ;;  %v3891_v8 = vmul.f32 0.01, %v4548_v62  ;;  %v4552_v59 = vld [vmem:[#allocation24_spill] sm:$0xff] }
 0x276   :  { %v3870_v12 = vmul.f32 0.01, %v4544_v4  ;;  %4546 = vst [vmem:[#allocation32_spill] sm:$0xff] %v3873_v33  ;;  %v4550_v33 = vld [vmem:[#allocation23_spill] sm:$0xff]  ;;  %v3897_v18 = vmul.f32 0.01, %v4552_v59 }
 0x277   :  { %4549 = vst [vmem:[#allocation16_spill] sm:$0xff] %v3891_v8  ;;  %v4554_v45 = vld [vmem:[#allocation2_spill] sm:$0xff]  ;;  %1478 = vst.msk [vmem:[%s4322_s4 + $0x78] sm:$0xff] %vm665_vm1, %v1414_v5  ;;  %vm1325_vm2 = vcmp.gt.f32.partialorder %v4548_v62, 0.0  ;;  %v4557_v8 = vld [vmem:[#allocation19_spill] sm:$0xff]  ;;  %v1416_v5 = vsel %vm1288_vm4, %v3394_v22, %v3644_v20  ;;  %vm4568_vm7 = vcmp.gt.f32.partialorder %v3402_v60, 0.0 }
 0x278   :  { %4545 = vst [vmem:[#allocation13_spill] sm:$0xff] %v3870_v12  ;;  %v3894_v12 = vmul.f32 0.01, %v4550_v33  ;;  %4553 = vst [vmem:[#allocation24_spill] sm:$0xff] %v3897_v18  ;;  %v1415_v58 = vsel %vm1287_vm3, %v3390_v30, %v4554_v45  ;;  %v3915_v1 = vmul.f32 0.01, %v4557_v8 }
 0x279   :  { %v4559_v30 = vld [vmem:[#allocation20_spill] sm:$0xff]  ;;  %1479 = vst.msk [vmem:[%s4322_s4 + $0x80] sm:$0xff] %vm665_vm1, %v1415_v58  ;;  %vm1329_vm3 = vcmp.gt.f32.partialorder %v4557_v8, 0.0  ;;  %v4564_v22 = vld [vmem:[#allocation6_spill] sm:$0xff]  ;;  %v1417_v58 = vsel %vm1289_vm5, %v3398_v50, %v3655_v28  ;;  %1480 = vst.msk [vmem:[%s4322_s4 + $0x88] sm:$0xff] %vm665_vm1, %v1416_v5  ;;  %vm4569_vm5 = vcmp.gt.f32.partialorder %v3406_v11, 0.0 }
 0x27a   :  { %4551 = vst [vmem:[#allocation23_spill] sm:$0xff] %v3894_v12  ;;  %v4555_v12 = vld [vmem:[#allocation25_spill] sm:$0xff]  ;;  %4558 = vst [vmem:[#allocation19_spill] sm:$0xff] %v3915_v1  ;;  %v3918_v45 = vmul.f32 0.01, %v4559_v30  ;;  %v4562_v1 = vld [vmem:[#allocation3_spill] sm:$0xff]  ;;  %v1419_v50 = vsel %vm4569_vm5, %v3406_v11, %v3661_v44 }
 0x27b   :  { %v3912_v18 = vmul.f32 0.01, %v4555_v12  ;;  %v4561_v12 = vld [vmem:[#allocation21_spill] sm:$0xff]  ;;  %v3939_v20 = vmul.f32 0.01, %v4564_v22  ;;  %vm1333_vm4 = vcmp.gt.f32.partialorder %v4564_v22, 0.0 }
 0x27c   :  { %4560 = vst [vmem:[#allocation20_spill] sm:$0xff] %v3918_v45  ;;  %v3933_v45 = vmul.f32 0.01, %v4561_v12  ;;  %v4566_v12 = vld [vmem:[#allocation22_spill] sm:$0xff]  ;;  %vm4570_vm6 = vcmp.gt.f32.partialorder %v3410_v9, 0.0  ;;  %1481 = vst.msk [vmem:[%s4322_s4 + $0x90] sm:$0xff] %vm665_vm1, %v1417_v58 }
 0x27d   :  { %4556 = vst [vmem:[#allocation2_spill] sm:$0xff] %v3912_v18  ;;  %v3936_v18 = vmul.f32 0.01, %v4562_v1  ;;  %4565 = vst [vmem:[#allocation6_spill] sm:$0xff] %v3939_v20  ;;  %vm1334_vm8 = vcmp.gt.f32.partialorder %v4566_v12, 0.0  ;;  %v1420_v28 = vsel %vm4570_vm6, %v3410_v9, %v3672_v53  ;;  %v4571_v5 = vld [vmem:[#allocation5_spill] sm:$0xff] }
 0x27e   :  { %v3952_v1 = vmul.f32 0.01, %v4566_v12  ;;  %vm4573_vm5 = vcmp.gt.f32.partialorder %v3422_v24, 0.0  ;;  %v4574_v44 = vld [vmem:[#allocation8_spill] sm:$0xff]  ;;  %vm4575_vm6 = vcmp.gt.f32.partialorder %v3426_v23, 0.0  ;;  %1483 = vst.msk [vmem:[%s4322_s4 + $0xa0] sm:$0xff] %vm665_vm1, %v1419_v50 }
 0x27f   :  { %4563 = vst [vmem:[#allocation34_spill] sm:$0xff] %v3936_v18  ;;  %v4567_v18 = vld [vmem:[#allocation4_spill] sm:$0xff]  ;;  %v1423_v9 = vsel %vm4573_vm5, %v3422_v24, %v3689_v19  ;;  %v1424_v53 = vsel %vm4575_vm6, %v3426_v23, %v4574_v44  ;;  %1484 = vst.msk [vmem:[%s4322_s4 + $0xa8] sm:$0xff] %vm665_vm1, %v1420_v28  ;;  %v4578_v23 = vld [vmem:[#allocation7_spill] sm:$0xff]  ;;  %vm4579_vm5 = vcmp.gt.f32.partialorder %v3442_v39, 0.0  ;;  %vm4581_vm6 = vcmp.gt.f32.partialorder %v3454_v56, 0.0 }
 0x280   :  { %v1418_v20 = vsel %vm4568_vm7, %v3402_v60, %v4567_v18  ;;  %v1421_v60 = vsel %vm1293_vm9, %v3414_v17, %v4571_v5  ;;  %vm4572_vm7 = vcmp.gt.f32.partialorder %v3418_v16, 0.0  ;;  %v1425_v17 = vsel %vm1297_vm10, %v3430_v32, %v3695_v46  ;;  %1487 = vst.msk [vmem:[%s4322_s4 + $0xc0] sm:$0xff] %vm665_vm1, %v1423_v9  ;;  %1488 = vst.msk [vmem:[%s4322_s4 + $0xc8] sm:$0xff] %vm665_vm1, %v1424_v53  ;;  %v4590_v19 = vld [vmem:[#allocation28_spill] sm:$0xff]  ;;  %v4612_v58 = vld [vmem:[#allocation33_spill] sm:$0xff] }
 0x281   :  { %v1422_v11 = vsel %vm4572_vm7, %v3418_v16, %v3678_v43  ;;  %1482 = vst.msk [vmem:[%s4322_s4 + $0x98] sm:$0xff] %vm665_vm1, %v1418_v20  ;;  %vm4576_vm9 = vcmp.gt.f32.partialorder %v3434_v31, 0.0  ;;  %vm4577_vm7 = vcmp.gt.f32.partialorder %v3438_v40, 0.0  ;;  %v1428_v43 = vsel %vm4579_vm5, %v3442_v39, %v4578_v23  ;;  %1485 = vst.msk [vmem:[%s4322_s4 + $0xb0] sm:$0xff] %vm665_vm1, %v1421_v60  ;;  %v4610_v18 = vld [vmem:[#allocation32_spill] sm:$0xff]  ;;  %v4621_v44 = vld [vmem:[#allocation25_spill] sm:$0xff] }
 0x282   :  { %v1426_v16 = vsel %vm4576_vm9, %v3434_v31, %v3706_v52  ;;  %v1427_v24 = vsel %vm4577_vm7, %v3438_v40, %v3709_v29  ;;  %1486 = vst.msk [vmem:[%s4322_s4 + $0xb8] sm:$0xff] %vm665_vm1, %v1422_v11  ;;  %v1429_v32 = vsel %vm1301_vm11, %v3446_v48, %v3725_v34  ;;  %vm4580_vm10 = vcmp.gt.f32.partialorder %v3450_v47, 0.0  ;;  %1489 = vst.msk [vmem:[%s4322_s4 + $0xd0] sm:$0xff] %vm665_vm1, %v1425_v17  ;;  %v4592_v52 = vld [vmem:[#allocation10_spill] sm:$0xff]  ;;  %v4613_v50 = vld [vmem:[#allocation12_spill] sm:$0xff] }
 0x283   :  { %v1430_v31 = vsel %vm4580_vm10, %v3450_v47, %v3728_v15  ;;  %v1431_v40 = vsel %vm4581_vm6, %v3454_v56, %v3731_v7  ;;  %vm4582_vm9 = vcmp.gt.f32.partialorder %v3458_v55, 0.0  ;;  %1490 = vst.msk [vmem:[%s4322_s4 + $0xd8] sm:$0xff] %vm665_vm1, %v1426_v16  ;;  %1491 = vst.msk [vmem:[%s4322_s4 + $0xe0] sm:$0xff] %vm665_vm1, %v1427_v24  ;;  %v1433_v48 = vsel %vm1305_vm12, %v3462_v0, %v3748_v49  ;;  %v4583_v47 = vld [vmem:[#allocation11_spill] sm:$0xff]  ;;  %v4587_v0 = vld [vmem:[#allocation26_spill] sm:$0xff] }
 0x284   :  { %v1432_v39 = vsel %vm4582_vm9, %v3458_v55, %v3745_v38  ;;  %1492 = vst.msk [vmem:[%s4322_s4 + $0xe8] sm:$0xff] %vm665_vm1, %v1428_v43  ;;  %vm4584_vm11 = vcmp.gt.f32.partialorder %v3466_v63, 0.0  ;;  %vm4585_vm7 = vcmp.gt.f32.partialorder %v3470_v21, 0.0  ;;  %vm4586_vm5 = vcmp.gt.f32.partialorder %v3474_v51, 0.0  ;;  %1493 = vst.msk [vmem:[%s4322_s4 + $0xf0] sm:$0xff] %vm665_vm1, %v1429_v32  ;;  %v4596_v34 = vld [vmem:[#allocation14_spill] sm:$0xff] }
 0x285   :  { %v1434_v56 = vsel %vm4584_vm11, %v3466_v63, %v4583_v47  ;;  %v1435_v55 = vsel %vm4585_vm7, %v3470_v21, %v3765_v42  ;;  %v1436_v46 = vsel %vm4586_vm5, %v3474_v51, %v3768_v57  ;;  %1494 = vst.msk [vmem:[%s4322_s4 + $0xf8] sm:$0xff] %vm665_vm1, %v1430_v31  ;;  %1495 = vst.msk [vmem:[%s4322_s4 + $0x100] sm:$0xff] %vm665_vm1, %v1431_v40  ;;  %v4588_v21 = vld [vmem:[#allocation27_spill] sm:$0xff]  ;;  %vm4589_vm12 = vcmp.gt.f32.partialorder %v3482_v25, 0.0  ;;  %v4600_v49 = vld [vmem:[#allocation30_spill] sm:$0xff] }
 0x286   :  { %1496 = vst.msk [vmem:[%s4322_s4 + $0x108] sm:$0xff] %vm665_vm1, %v1432_v39  ;;  %v1437_v63 = vsel %vm1309_vm13, %v3478_v27, %v4587_v0  ;;  %v1438_v51 = vsel %vm4589_vm12, %v3482_v25, %v4588_v21  ;;  %vm4591_vm10 = vcmp.gt.f32.partialorder %v3486_v3, 0.0  ;;  %vm4593_vm6 = vcmp.gt.f32.partialorder %v4531_v13, 0.0  ;;  %1497 = vst.msk [vmem:[%s4322_s4 + $0x110] sm:$0xff] %vm665_vm1, %v1433_v48  ;;  %v4594_v25 = vld [vmem:[#allocation15_spill] sm:$0xff]  ;;  %v4602_v42 = vld [vmem:[#allocation18_spill] sm:$0xff] }
 0x287   :  { %v1439_v7 = vsel %vm4591_vm10, %v3486_v3, %v4590_v19  ;;  %v1440_v29 = vsel %vm4593_vm6, %v4531_v13, %v4592_v52  ;;  %1498 = vst.msk [vmem:[%s4322_s4 + $0x118] sm:$0xff] %vm665_vm1, %v1434_v56  ;;  %1499 = vst.msk [vmem:[%s4322_s4 + $0x120] sm:$0xff] %vm665_vm1, %v1435_v55  ;;  %v1441_v27 = vsel %vm1313_vm14, %v4533_v6, %v3807_v14  ;;  %vm4595_vm13 = vcmp.gt.f32.partialorder %v3498_v61, 0.0  ;;  %v4604_v13 = vld [vmem:[#allocation31_spill] sm:$0xff]  ;;  %v4605_v14 = vld [vmem:[#allocation17_spill] sm:$0xff] }
 0x288   :  { %1500 = vst.msk [vmem:[%s4322_s4 + $0x128] sm:$0xff] %vm665_vm1, %v1436_v46  ;;  %v1442_v3 = vsel %vm4595_vm13, %v3498_v61, %v4594_v25  ;;  %vm4597_vm9 = vcmp.gt.f32.partialorder %v4535_v2, 0.0  ;;  %vm4598_vm11 = vcmp.gt.f32.partialorder %v3506_v41, 0.0  ;;  %1501 = vst.msk [vmem:[%s4322_s4 + $0x130] sm:$0xff] %vm665_vm1, %v1437_v63  ;;  %v4599_v61 = vld [vmem:[#allocation29_spill] sm:$0xff]  ;;  %vm4601_vm14 = vcmp.gt.f32.partialorder %v3514_v54, 0.0 }
 0x289   :  { %v1443_v15 = vsel %vm4597_vm9, %v4535_v2, %v4596_v34  ;;  %v1444_v38 = vsel %vm4598_vm11, %v3506_v41, %v3828_v26  ;;  %1502 = vst.msk [vmem:[%s4322_s4 + $0x138] sm:$0xff] %vm665_vm1, %v1438_v51  ;;  %1503 = vst.msk [vmem:[%s4322_s4 + $0x140] sm:$0xff] %vm665_vm1, %v1439_v7  ;;  %v1445_v41 = vsel %vm1317_vm15, %v3510_v10, %v4599_v61  ;;  %vm4603_vm7 = vcmp.gt.f32.partialorder %v4539_v36, 0.0  ;;  %v4607_v10 = vld [vmem:[#allocation9_spill] sm:$0xff]  ;;  %v4618_v60 = vld [vmem:[#allocation24_spill] sm:$0xff] }
 0x28a   :  { %1504 = vst.msk [vmem:[%s4322_s4 + $0x148] sm:$0xff] %vm665_vm1, %v1440_v29  ;;  %v1446_v57 = vsel %vm4601_vm14, %v3514_v54, %v4600_v49  ;;  %v1447_v6 = vsel %vm4603_vm7, %v4539_v36, %v4602_v42  ;;  %vm4606_vm5 = vcmp.gt.f32.partialorder %v4605_v14, 0.0  ;;  %1505 = vst.msk [vmem:[%s4322_s4 + $0x150] sm:$0xff] %vm665_vm1, %v1441_v27  ;;  %v1449_v54 = vsel %vm1321_vm0, %v4542_v35, %v4607_v10  ;;  %v4608_v26 = vld [vmem:[#allocation13_spill] sm:$0xff]  ;;  %v4616_v35 = vld [vmem:[#allocation23_spill] sm:$0xff] }
 0x28b   :  { %v1448_v2 = vsel %vm4606_vm5, %v4605_v14, %v4604_v13  ;;  %1506 = vst.msk [vmem:[%s4322_s4 + $0x158] sm:$0xff] %vm665_vm1, %v1442_v3  ;;  %1507 = vst.msk [vmem:[%s4322_s4 + $0x160] sm:$0xff] %vm665_vm1, %v1443_v15  ;;  %vm4609_vm15 = vcmp.gt.f32.partialorder %v4544_v4, 0.0  ;;  %vm4611_vm12 = vcmp.gt.f32.partialorder %v3534_v37, 0.0  ;;  %vm4614_vm10 = vcmp.gt.f32.partialorder %v4613_v50, 0.0  ;;  %v4620_v9 = vld [vmem:[#allocation2_spill] sm:$0xff] }
 0x28c   :  { %1508 = vst.msk [vmem:[%s4322_s4 + $0x168] sm:$0xff] %vm665_vm1, %v1444_v38  ;;  %v1450_v36 = vsel %vm4609_vm15, %v4544_v4, %v4608_v26  ;;  %v1451_v20 = vsel %vm4611_vm12, %v3534_v37, %v4610_v18  ;;  %v1452_v28 = vsel %vm4614_vm10, %v4613_v50, %v4612_v58  ;;  %1509 = vst.msk [vmem:[%s4322_s4 + $0x170] sm:$0xff] %vm665_vm1, %v1445_v41  ;;  %v4615_v37 = vld [vmem:[#allocation16_spill] sm:$0xff]  ;;  %vm4617_vm0 = vcmp.gt.f32.partialorder %v4550_v33, 0.0  ;;  %v4626_v16 = vld [vmem:[#allocation21_spill] sm:$0xff] }
 0x28d   :  { %1510 = vst.msk [vmem:[%s4322_s4 + $0x178] sm:$0xff] %vm665_vm1, %v1446_v57  ;;  %1511 = vst.msk [vmem:[%s4322_s4 + $0x180] sm:$0xff] %vm665_vm1, %v1447_v6  ;;  %v1453_v4 = vsel %vm1325_vm2, %v4548_v62, %v4615_v37  ;;  %v1454_v5 = vsel %vm4617_vm0, %v4550_v33, %v4616_v35  ;;  %vm4619_vm6 = vcmp.gt.f32.partialorder %v4552_v59, 0.0  ;;  %vm4622_vm13 = vcmp.gt.f32.partialorder %v4621_v44, 0.0  ;;  %v4623_v33 = vld [vmem:[#allocation19_spill] sm:$0xff]  ;;  %v4628_v23 = vld [vmem:[#allocation34_spill] sm:$0xff] }
 0x28e   :  { %1512 = vst.msk [vmem:[%s4322_s4 + $0x188] sm:$0xff] %vm665_vm1, %v1448_v2  ;;  %v1455_v11 = vsel %vm4619_vm6, %v4552_v59, %v4618_v60  ;;  %v1456_v53 = vsel %vm4622_vm13, %v4621_v44, %v4620_v9  ;;  %1513 = vst.msk [vmem:[%s4322_s4 + $0x190] sm:$0xff] %vm665_vm1, %v1449_v54  ;;  %v1457_v62 = vsel %vm1329_vm3, %v4557_v8, %v4623_v33  ;;  %v4624_v59 = vld [vmem:[#allocation20_spill] sm:$0xff]  ;;  %vm4625_vm2 = vcmp.gt.f32.partialorder %v4559_v30, 0.0  ;;  %v4629_v43 = vld [vmem:[#allocation3_spill] sm:$0xff] }
 0x28f   :  { %1514 = vst.msk [vmem:[%s4322_s4 + $0x198] sm:$0xff] %vm665_vm1, %v1450_v36  ;;  %1515 = vst.msk [vmem:[%s4322_s4 + $0x1a0] sm:$0xff] %vm665_vm1, %v1451_v20  ;;  %v1458_v17 = vsel %vm4625_vm2, %v4559_v30, %v4624_v59  ;;  %vm4627_vm9 = vcmp.gt.f32.partialorder %v4626_v16, 0.0  ;;  %vm4630_vm11 = vcmp.gt.f32.partialorder %v4629_v43, 0.0  ;;  %v4631_v8 = vld [vmem:[#allocation6_spill] sm:$0xff] }
 0x290   :  { %1516 = vst.msk [vmem:[%s4322_s4 + $0x1a8] sm:$0xff] %vm665_vm1, %v1452_v28  ;;  %v1459_v24 = vsel %vm4627_vm9, %v4626_v16, %v3933_v45  ;;  %v1460_v32 = vsel %vm4630_vm11, %v4629_v43, %v4628_v23  ;;  %1517 = vst.msk [vmem:[%s4322_s4 + $0x1b0] sm:$0xff] %vm665_vm1, %v1453_v4  ;;  %v1461_v30 = vsel %vm1333_vm4, %v4564_v22, %v4631_v8 }
 0x291   :  { %1518 = vst.msk [vmem:[%s4322_s4 + $0x1b8] sm:$0xff] %vm665_vm1, %v1454_v5  ;;  %1519 = vst.msk [vmem:[%s4322_s4 + $0x1c0] sm:$0xff] %vm665_vm1, %v1455_v11  ;;  %v1462_v45 = vsel %vm1334_vm8, %v4566_v12, %v3952_v1 }
 0x292   :  { %1520 = vst.msk [vmem:[%s4322_s4 + $0x1c8] sm:$0xff] %vm665_vm1, %v1456_v53  ;;  %1521 = vst.msk [vmem:[%s4322_s4 + $0x1d0] sm:$0xff] %vm665_vm1, %v1457_v62 }
 0x293   :  { %1522 = vst.msk [vmem:[%s4322_s4 + $0x1d8] sm:$0xff] %vm665_vm1, %v1458_v17  ;;  %1523 = vst.msk [vmem:[%s4322_s4 + $0x1e0] sm:$0xff] %vm665_vm1, %v1459_v24 }
 0x294   :  { %1524 = vst.msk [vmem:[%s4322_s4 + $0x1e8] sm:$0xff] %vm665_vm1, %v1460_v32  ;;  %1525 = vst.msk [vmem:[%s4322_s4 + $0x1f0] sm:$0xff] %vm665_vm1, %v1461_v30 }
 0x295   :  { %1526 = vst.msk [vmem:[%s4322_s4 + $0x1f8] sm:$0xff] %vm665_vm1, %v1462_v45 }

</bundles_post_ra>
